<compile_context>
chip_gen: v5e
topology: v5e:2x2
jax: 0.10.0
libtpu: 0.0.40
codegen_flags: <defaults>
</compile_context>

<pallas_src>
import math

import jax
import jax.numpy as jnp
from jax.experimental import pallas as pl
from jax.experimental.pallas import tpu as pltpu

BN_EPS = 1e-5


def _ceil_to(n, m):
    return ((n + m - 1) // m) * m


def _make_phead_kernel(b_real):
    """Builds the fused Phead forward kernel for true batch size `b_real`."""

    def kernel(x_ref,
               g1_ref, b1_ref, g2_ref, b2_ref, g4_ref, b4_ref, b5_ref,
               wnet_hbm, w1_hbm, w2_hbm, w3_hbm, w4_hbm, w5_hbm,
               emb_ref, py_ref,
               wbuf, act_a, act_b, sem):
        bp = x_ref.shape[0]
        need_mask = (bp != b_real)                 # trace-time branch
        inv_b = jnp.float32(1.0 / b_real)
        if need_mask:
            row_mask = (jax.lax.broadcasted_iota(jnp.int32, (bp, 1), 0)
                        < b_real).astype(jnp.float32)

        # ---- DMA helpers on the shared (2, maxK, tn) bf16 double-buffer ------
        def start_w(w_hbm, idx, slot):
            k = w_hbm.shape[1]
            pltpu.make_async_copy(w_hbm.at[idx], wbuf.at[slot, :k, :],
                                  sem.at[slot]).start()

        def wait_w(w_hbm, idx, slot):
            k = w_hbm.shape[1]
            pltpu.make_async_copy(w_hbm.at[idx], wbuf.at[slot, :k, :],
                                  sem.at[slot]).wait()

        def stream_layer(lhs_bf, w_hbm, slot0, emit, next_w_hbm=None,
                         primed=False):
            """out[:, n*tn:(n+1)*tn] = emit(lhs @ chunk_n), streaming bf16
            weight chunks from HBM through the shared double-buffer.  Starts
            the next layer's chunk-0 DMA during the last chunk.  Returns the
            buffer slot that next layer's chunk 0 occupies."""
            nc, k, tn = w_hbm.shape
            if not primed:
                start_w(w_hbm, 0, slot0)
            for n in range(nc):                    # static unroll (nc is small)
                slot = (slot0 + n) & 1
                wait_w(w_hbm, n, slot)
                if n + 1 < nc:                     # prefetch our next chunk
                    start_w(w_hbm, n + 1, 1 - slot)
                elif next_w_hbm is not None:       # chain next layer's chunk 0
                    start_w(next_w_hbm, 0, 1 - slot)
                part = jnp.dot(lhs_bf, wbuf[slot, :k, :],
                               preferred_element_type=jnp.float32)
                emit(n * tn, part)
            return (slot0 + nc) & 1

        # ---- BatchNorm1d (training mode, biased batch stats) on one chunk ----
        # BN statistics are per output feature, so each [bp, tn] slab is
        # self-contained; padded batch rows are masked out of the statistics.
        def bn(part, off, g_ref=None, b_ref=None):
            tn = part.shape[1]
            hm = part * row_mask if need_mask else part
            mu = jnp.sum(hm, axis=0, keepdims=True) * inv_b
            ex2 = jnp.sum(hm * part, axis=0, keepdims=True) * inv_b
            var = jnp.maximum(ex2 - mu * mu, 0.0)
            y = (part - mu) * jax.lax.rsqrt(var + BN_EPS)
            if g_ref is not None:
                y = y * g_ref[:, off:off + tn] + b_ref[:, off:off + tn]
            return y

        # Static padded feature widths, derived from the chunked weight shapes.
        din = wnet_hbm.shape[0] * wnet_hbm.shape[2]
        hid = w1_hbm.shape[0] * w1_hbm.shape[2]
        pse = w3_hbm.shape[0] * w3_hbm.shape[2]
        prd = w4_hbm.shape[0] * w4_hbm.shape[2]

        # ---- L0: backbone stand-in, feat = x @ Wnet  -> bf16 act_a ------------
        def emit_feat(off, part):
            act_a[:, off:off + part.shape[1]] = part.astype(jnp.bfloat16)
        s = stream_layer(x_ref[...], wnet_hbm, 0, emit_feat, next_w_hbm=w1_hbm)

        # ---- L1: Linear(dim_in, hidden, bias=False) -> BN -> ReLU -> act_b ----
        def emit_h1(off, part):
            y = jnp.maximum(bn(part, off, g1_ref, b1_ref), 0.0)
            act_b[:, off:off + part.shape[1]] = y.astype(jnp.bfloat16)
        s = stream_layer(act_a[:, :din], w1_hbm, s, emit_h1,
                         next_w_hbm=w2_hbm, primed=True)

        # ---- L2: Linear(hidden, hidden, bias=False) -> BN -> ReLU -> act_a ----
        def emit_h2(off, part):
            y = jnp.maximum(bn(part, off, g2_ref, b2_ref), 0.0)
            act_a[:, off:off + part.shape[1]] = y.astype(jnp.bfloat16)
        s = stream_layer(act_b[:, :hid], w2_hbm, s, emit_h2,
                         next_w_hbm=w3_hbm, primed=True)

        # ---- L3: Linear(hidden, pseudo, bias=False) -> BN(affine=False) -------
        #      f32 copy to emb_ref (kernel output), bf16 copy to act_b (pfc LHS)
        def emit_emb(off, part):
            y = bn(part, off)
            emb_ref[:, off:off + part.shape[1]] = y
            act_b[:, off:off + part.shape[1]] = y.astype(jnp.bfloat16)
        s = stream_layer(act_a[:, :hid], w3_hbm, s, emit_emb,
                         next_w_hbm=w4_hbm, primed=True)

        # ---- L4: pfc Linear(pseudo, pred_dim, bias=False) -> BN -> ReLU -------
        def emit_p(off, part):
            y = jnp.maximum(bn(part, off, g4_ref, b4_ref), 0.0)
            act_a[:, off:off + part.shape[1]] = y.astype(jnp.bfloat16)
        s = stream_layer(act_b[:, :pse], w4_hbm, s, emit_p,
                         next_w_hbm=w5_hbm, primed=True)

        # ---- L5: pfc Linear(pred_dim, pseudo) (+bias) -> py_ref ----------------
        def emit_py(off, part):
            tn = part.shape[1]
            py_ref[:, off:off + tn] = part + b5_ref[:, off:off + tn]
        stream_layer(act_a[:, :prd], w5_hbm, s, emit_py, primed=True)

    return kernel


def phead_forward(x_nchw, params):
    """Runs the Phead forward pass.  Returns (emb1, py1)."""
    B = x_nchw.shape[0]
    x_flat = x_nchw.reshape(B, -1)                         # glue: NCHW -> [B, C*H*W]
    feat_in = x_flat.shape[1]

    hidden, dim_in = params["w1"].shape                    # PyTorch layout [out, in]
    pseudo = params["w3"].shape[0]
    pred_dim = params["w4"].shape[0]

    # --- pad to TPU-friendly shapes (sublane 8 on batch, lane 128 on features)
    bp = _ceil_to(B, 8)
    fin_p = _ceil_to(feat_in, 128)
    din_p = _ceil_to(dim_in, 128)
    hid_p = _ceil_to(hidden, 128)
    pse_p = _ceil_to(pseudo, 128)
    prd_p = _ceil_to(pred_dim, 128)

    # bf16 input (matmul LHS is bf16 anyway), zero-padded rows/lanes.
    xp = jnp.pad(x_flat.astype(jnp.bfloat16),
                 ((0, bp - B), (0, fin_p - feat_in)))

    # --- common chunk width tn: multiple of 128 dividing every output width,
    #     largest such that the biggest chunk (maxK x tn bf16) stays <= ~2 MiB.
    out_dims = (din_p, hid_p, hid_p, pse_p, prd_p, pse_p)
    k_dims = (fin_p, din_p, hid_p, hid_p, pse_p, prd_p)
    max_k = max(k_dims)
    g = 0
    for n in out_dims:
        g = math.gcd(g, n)
    target_chunk_bytes = 2 << 20
    tn = 128
    t = 128
    while t <= g:
        if g % t == 0 and max_k * t * 2 <= target_chunk_bytes:
            tn = t
        t += 128

    def prep_w(w, n_p, k_p):
        """[N, K] (PyTorch [out, in]) -> bf16 chunks [N_p//tn, K_p, tn].
        Cast to bf16 FIRST so the XLA re-layout pass moves half the bytes."""
        wb = w.astype(jnp.bfloat16)
        wp = jnp.pad(wb, ((0, n_p - w.shape[0]), (0, k_p - w.shape[1])))
        return wp.T.reshape(k_p, n_p // tn, tn).transpose(1, 0, 2)

    wnet_c = prep_w(params["w_net"], din_p, fin_p)
    w1_c = prep_w(params["w1"], hid_p, din_p)
    w2_c = prep_w(params["w2"], hid_p, hid_p)
    w3_c = prep_w(params["w3"], pse_p, hid_p)
    w4_c = prep_w(params["w4"], prd_p, pse_p)
    w5_c = prep_w(params["w5"], pse_p, prd_p)
    weight_chunks = (wnet_c, w1_c, w2_c, w3_c, w4_c, w5_c)

    def prep_v(v, n_p):                                    # [1, N] -> [1, N_p] f32
        return jnp.pad(v.astype(jnp.float32), ((0, 0), (0, n_p - v.shape[1])))

    g1 = prep_v(params["g1"], hid_p); b1 = prep_v(params["b1"], hid_p)
    g2 = prep_v(params["g2"], hid_p); b2 = prep_v(params["b2"], hid_p)
    g4 = prep_v(params["g4"], prd_p); b4 = prep_v(params["b4"], prd_p)
    b5 = prep_v(params["b5"], pse_p)

    max_f = max(din_p, hid_p, pse_p, prd_p)                # ping-pong act width

    # --- VMEM budget: shared weight double-buffer + bf16 activations + io.
    wbuf_bytes = 2 * max_k * tn * 2
    act_bytes = 2 * bp * max_f * 2
    in_bytes = bp * fin_p * 2 + 4 * (4 * hid_p + 2 * prd_p + pse_p)
    out_bytes = 2 * bp * pse_p * 4
    need = wbuf_bytes + act_bytes + in_bytes + out_bytes + (4 << 20)
    try:
        vmem_cap = int(pltpu.get_tpu_info().vmem_capacity_bytes)
    except Exception:
        vmem_cap = 64 << 20                                # conservative (v7x)
    vmem_limit = int(max(32 << 20, min(need, vmem_cap - (2 << 20))))

    # --- advisory cost estimate (weight-bandwidth bound kernel)
    layer_kn = sum(k * n for k, n in zip(k_dims, out_dims))
    cost = pl.CostEstimate(
        flops=2 * bp * layer_kn,
        transcendentals=2 * hid_p + prd_p + pse_p,         # rsqrt per BN column
        bytes_accessed=2 * layer_kn + in_bytes + out_bytes)

    vmem_spec = lambda: pl.BlockSpec(memory_space=pltpu.MemorySpace.VMEM)
    hbm_spec = lambda: pl.BlockSpec(memory_space=pl.ANY)

    scratch_shapes = [
        pltpu.VMEM((2, max_k, tn), jnp.bfloat16),          # shared weight dbl-buf
        pltpu.VMEM((bp, max_f), jnp.bfloat16),             # activation ping
        pltpu.VMEM((bp, max_f), jnp.bfloat16),             # activation pong
        pltpu.SemaphoreType.DMA((2,)),
    ]

    emb_p, py_p = pl.pallas_call(
        _make_phead_kernel(B),
        out_shape=(jax.ShapeDtypeStruct((bp, pse_p), jnp.float32),
                   jax.ShapeDtypeStruct((bp, pse_p), jnp.float32)),
        in_specs=[vmem_spec() for _ in range(8)] + [hbm_spec() for _ in range(6)],
        out_specs=(vmem_spec(), vmem_spec()),
        scratch_shapes=scratch_shapes,
        compiler_params=pltpu.CompilerParams(vmem_limit_bytes=vmem_limit),
        cost_estimate=cost,
    )(xp, g1, b1, g2, b2, g4, b4, b5, *weight_chunks)

    # slice padded rows / lane-padding off
    return emb_p[:B, :pseudo], py_p[:B, :pseudo]


def phead_reference(x_nchw, params):
    """Plain-JAX reference mirroring the kernel's bf16-input / f32-accumulate
    matmuls and one-pass training-mode BatchNorm."""
    B = x_nchw.shape[0]
    x = x_nchw.reshape(B, -1).astype(jnp.float32)

    def mm(a, w):                                  # a [B,K] f32, w [N,K] f32
        return jnp.dot(a.astype(jnp.bfloat16), w.astype(jnp.bfloat16).T,
                       preferred_element_type=jnp.float32)

    def bn(h, gamma=None, beta=None):
        mu = jnp.mean(h, axis=0, keepdims=True)
        var = jnp.maximum(jnp.mean(h * h, axis=0, keepdims=True) - mu * mu, 0.0)
        y = (h - mu) * jax.lax.rsqrt(var + BN_EPS)
        if gamma is not None:
            y = y * gamma + beta
        return y

    feat = mm(x, params["w_net"])
    h = jnp.maximum(bn(mm(feat, params["w1"]), params["g1"], params["b1"]), 0.0)
    h = jnp.maximum(bn(mm(h, params["w2"]), params["g2"], params["b2"]), 0.0)
    emb = bn(mm(h, params["w3"]))
    p = jnp.maximum(bn(mm(emb, params["w4"]), params["g4"], params["b4"]), 0.0)
    py = mm(p, params["w5"]) + params["b5"]
    return emb, py


def make_params(key, feat_in, dim_in, hidden, pseudo, pred_dim):
    ks = jax.random.split(key, 13)

    def lin(k, fan_out, fan_in):                    # PyTorch Linear layout [out, in]
        return (jax.random.normal(k, (fan_out, fan_in), jnp.float32)
                * (1.0 / jnp.sqrt(fan_in)))

    return {
        "w_net": lin(ks[0], dim_in, feat_in),       # backbone stand-in
        "w1": lin(ks[1], hidden, dim_in),           # Linear(dim_in, hidden, bias=False)
        "g1": 1.0 + 0.1 * jax.random.normal(ks[6], (1, hidden), jnp.float32),
        "b1": 0.1 * jax.random.normal(ks[7], (1, hidden), jnp.float32),
        "w2": lin(ks[2], hidden, hidden),           # Linear(hidden, hidden, bias=False)
        "g2": 1.0 + 0.1 * jax.random.normal(ks[8], (1, hidden), jnp.float32),
        "b2": 0.1 * jax.random.normal(ks[9], (1, hidden), jnp.float32),
        "w3": lin(ks[3], pseudo, hidden),           # Linear(hidden, pseudo, bias=False)
        "w4": lin(ks[4], pred_dim, pseudo),         # pfc Linear(pseudo, pred_dim, bias=False)
        "g4": 1.0 + 0.1 * jax.random.normal(ks[10], (1, pred_dim), jnp.float32),
        "b4": 0.1 * jax.random.normal(ks[11], (1, pred_dim), jnp.float32),
        "w5": lin(ks[5], pseudo, pred_dim),         # pfc Linear(pred_dim, pseudo)
        "b5": 0.01 * jax.random.normal(ks[12], (1, pseudo), jnp.float32),
    }


if __name__ == "__main__":
    # Small shapes consistent with the module (scaled down from
    # dim_in=2048, hidden_mlp=2048, pred_dim=512, pseudo=3000).
    B, C, H, W = 2, 4, 16, 16
    dim_in, hidden, pseudo, pred_dim = 32, 32, 64, 16

    key = jax.random.PRNGKey(0)
    kx, kp = jax.random.split(key)
    x1 = jax.random.normal(kx, (B, C, H, W), jnp.float32)          # NCHW input
    params = make_params(kp, C * H * W, dim_in, hidden, pseudo, pred_dim)

    emb1, py1 = phead_forward(x1, params)
    jax.block_until_ready((emb1, py1))

    emb_ref, py_ref = phead_reference(x1, params)
    assert emb1.shape == (B, pseudo) and py1.shape == (B, pseudo)
    assert jnp.allclose(emb1, emb_ref, atol=1e-2, rtol=1e-2), (
        float(jnp.max(jnp.abs(emb1 - emb_ref))))
    assert jnp.allclose(py1, py_ref, atol=1e-2, rtol=1e-2), (
        float(jnp.max(jnp.abs(py1 - py_ref))))

    print("KERNEL_OK")
</pallas_src>

<mosaic_0001>
module attributes {stable_mosaic.version = 11 : i64} {
  func.func @kernel(%arg0: memref<8x1024xbf16, #tpu.memory_space<vmem>>, %arg1: memref<1x128xf32, #tpu.memory_space<vmem>>, %arg2: memref<1x128xf32, #tpu.memory_space<vmem>>, %arg3: memref<1x128xf32, #tpu.memory_space<vmem>>, %arg4: memref<1x128xf32, #tpu.memory_space<vmem>>, %arg5: memref<1x128xf32, #tpu.memory_space<vmem>>, %arg6: memref<1x128xf32, #tpu.memory_space<vmem>>, %arg7: memref<1x128xf32, #tpu.memory_space<vmem>>, %arg8: memref<1x1024x128xbf16, #tpu.memory_space<any>>, %arg9: memref<1x128x128xbf16, #tpu.memory_space<any>>, %arg10: memref<1x128x128xbf16, #tpu.memory_space<any>>, %arg11: memref<1x128x128xbf16, #tpu.memory_space<any>>, %arg12: memref<1x128x128xbf16, #tpu.memory_space<any>>, %arg13: memref<1x128x128xbf16, #tpu.memory_space<any>>, %arg14: memref<8x128xf32, #tpu.memory_space<vmem>>, %arg15: memref<8x128xf32, #tpu.memory_space<vmem>>, %arg16: memref<2x1024x128xbf16, #tpu.memory_space<vmem>>, %arg17: memref<8x128xbf16, #tpu.memory_space<vmem>>, %arg18: memref<8x128xbf16, #tpu.memory_space<vmem>>, %arg19: memref<2x!tpu.dma_semaphore, #tpu.memory_space<semaphore_mem>>) attributes {dimension_semantics = [], scalar_prefetch = 0 : i64, scratch_operands = 4 : i64, tpu.core_type = #tpu.core_type<tc>} {
    %0 = tpu.iota {dimensions = array<i32: 0>} : vector<8x1xi32>
    %c2_i32 = arith.constant 2 : i32
    %1 = vector.broadcast %c2_i32 : i32 to vector<8x1xi32>
    %2 = arith.cmpi slt, %0, %1 : vector<8x1xi32>
    %3 = arith.extui %2 : vector<8x1xi1> to vector<8x1xi32>
    %4 = arith.sitofp %3 : vector<8x1xi32> to vector<8x1xf32>
    %c0 = arith.constant 0 : index
    %c0_0 = arith.constant 0 : index
    %5 = vector.load %arg0[%c0, %c0_0] : memref<8x1024xbf16, #tpu.memory_space<vmem>>, vector<8x1024xbf16>
    %c0_i32 = arith.constant 0 : i32
    %c0_i32_1 = arith.constant 0 : i32
    %c0_i32_2 = arith.constant 0 : i32
    %c0_i32_3 = arith.constant 0 : i32
    %c0_i32_4 = arith.constant 0 : i32
    %6 = tpu.memref_slice %arg8[%c0_i32, %c0_i32_3, %c0_i32_4] : memref<1x1024x128xbf16, #tpu.memory_space<any>> -> memref<1x1024x128xbf16, #tpu.memory_space<any>>
    %7 = tpu.memref_squeeze %6 : memref<1x1024x128xbf16, #tpu.memory_space<any>> -> memref<1024x128xbf16, #tpu.memory_space<any>>
    %c0_i32_5 = arith.constant 0 : i32
    %c0_i32_6 = arith.constant 0 : i32
    %8 = tpu.memref_slice %arg16[%c0_i32_1, %c0_i32_5, %c0_i32_6] : memref<2x1024x128xbf16, #tpu.memory_space<vmem>> -> memref<1x1024x128xbf16, #tpu.memory_space<vmem>>
    %9 = tpu.memref_squeeze %8 : memref<1x1024x128xbf16, #tpu.memory_space<vmem>> -> memref<1024x128xbf16, #tpu.memory_space<vmem>>
    %10 = tpu.memref_slice %arg19[%c0_i32_2] : memref<2x!tpu.dma_semaphore, #tpu.memory_space<semaphore_mem>> -> memref<1x!tpu.dma_semaphore, #tpu.memory_space<semaphore_mem>>
    %11 = tpu.memref_squeeze %10 : memref<1x!tpu.dma_semaphore, #tpu.memory_space<semaphore_mem>> -> memref<!tpu.dma_semaphore, #tpu.memory_space<semaphore_mem>>
    tpu.enqueue_dma source(%7 : memref<1024x128xbf16, #tpu.memory_space<any>>) target(%9 : memref<1024x128xbf16, #tpu.memory_space<vmem>>) target_semaphore(%11 : memref<!tpu.dma_semaphore, #tpu.memory_space<semaphore_mem>>)
    %c0_i32_7 = arith.constant 0 : i32
    %c0_i32_8 = arith.constant 0 : i32
    %c0_i32_9 = arith.constant 0 : i32
    %c0_i32_10 = arith.constant 0 : i32
    %c0_i32_11 = arith.constant 0 : i32
    %12 = tpu.memref_slice %arg8[%c0_i32_7, %c0_i32_10, %c0_i32_11] : memref<1x1024x128xbf16, #tpu.memory_space<any>> -> memref<1x1024x128xbf16, #tpu.memory_space<any>>
    %13 = tpu.memref_squeeze %12 : memref<1x1024x128xbf16, #tpu.memory_space<any>> -> memref<1024x128xbf16, #tpu.memory_space<any>>
    %c0_i32_12 = arith.constant 0 : i32
    %c0_i32_13 = arith.constant 0 : i32
    %14 = tpu.memref_slice %arg16[%c0_i32_8, %c0_i32_12, %c0_i32_13] : memref<2x1024x128xbf16, #tpu.memory_space<vmem>> -> memref<1x1024x128xbf16, #tpu.memory_space<vmem>>
    %15 = tpu.memref_squeeze %14 : memref<1x1024x128xbf16, #tpu.memory_space<vmem>> -> memref<1024x128xbf16, #tpu.memory_space<vmem>>
    %16 = tpu.memref_slice %arg19[%c0_i32_9] : memref<2x!tpu.dma_semaphore, #tpu.memory_space<semaphore_mem>> -> memref<1x!tpu.dma_semaphore, #tpu.memory_space<semaphore_mem>>
    %17 = tpu.memref_squeeze %16 : memref<1x!tpu.dma_semaphore, #tpu.memory_space<semaphore_mem>> -> memref<!tpu.dma_semaphore, #tpu.memory_space<semaphore_mem>>
    tpu.wait_dma2 semaphore(%17 : memref<!tpu.dma_semaphore, #tpu.memory_space<semaphore_mem>>) src(%13 : memref<1024x128xbf16, #tpu.memory_space<any>>) dst(%15 : memref<1024x128xbf16, #tpu.memory_space<vmem>>)
    %c0_i32_14 = arith.constant 0 : i32
    %c1_i32 = arith.constant 1 : i32
    %c1_i32_15 = arith.constant 1 : i32
    %c0_i32_16 = arith.constant 0 : i32
    %c0_i32_17 = arith.constant 0 : i32
    %18 = tpu.memref_slice %arg9[%c0_i32_14, %c0_i32_16, %c0_i32_17] : memref<1x128x128xbf16, #tpu.memory_space<any>> -> memref<1x128x128xbf16, #tpu.memory_space<any>>
    %19 = tpu.memref_squeeze %18 : memref<1x128x128xbf16, #tpu.memory_space<any>> -> memref<128x128xbf16, #tpu.memory_space<any>>
    %c0_i32_18 = arith.constant 0 : i32
    %c0_i32_19 = arith.constant 0 : i32
    %20 = tpu.memref_slice %arg16[%c1_i32, %c0_i32_18, %c0_i32_19] : memref<2x1024x128xbf16, #tpu.memory_space<vmem>> -> memref<1x128x128xbf16, #tpu.memory_space<vmem>>
    %21 = tpu.memref_squeeze %20 : memref<1x128x128xbf16, #tpu.memory_space<vmem>> -> memref<128x128xbf16, #tpu.memory_space<vmem>>
    %22 = tpu.memref_slice %arg19[%c1_i32_15] : memref<2x!tpu.dma_semaphore, #tpu.memory_space<semaphore_mem>> -> memref<1x!tpu.dma_semaphore, #tpu.memory_space<semaphore_mem>>
    %23 = tpu.memref_squeeze %22 : memref<1x!tpu.dma_semaphore, #tpu.memory_space<semaphore_mem>> -> memref<!tpu.dma_semaphore, #tpu.memory_space<semaphore_mem>>
    tpu.enqueue_dma source(%19 : memref<128x128xbf16, #tpu.memory_space<any>>) target(%21 : memref<128x128xbf16, #tpu.memory_space<vmem>>) target_semaphore(%23 : memref<!tpu.dma_semaphore, #tpu.memory_space<semaphore_mem>>)
    %c0_20 = arith.constant 0 : index
    %c0_21 = arith.constant 0 : index
    %c0_22 = arith.constant 0 : index
    %24 = vector.load %arg16[%c0_20, %c0_21, %c0_22] : memref<2x1024x128xbf16, #tpu.memory_space<vmem>>, vector<1x1024x128xbf16>
    %25 = vector.shape_cast %24 : vector<1x1024x128xbf16> to vector<1024x128xbf16>
    %cst = arith.constant dense<0.000000e+00> : vector<8x128xf32>
    %26 = tpu.matmul %5, %25, %cst {dimension_numbers = #tpu.dot_dimension_numbers<[1], [0], [0], [1], [0, 0, 1, 1], [], []>} : vector<8x1024xbf16>, vector<1024x128xbf16>, vector<8x128xf32> -> vector<8x128xf32>
    %27 = arith.truncf %26 : vector<8x128xf32> to vector<8x128xbf16>
    %c0_23 = arith.constant 0 : index
    %c0_24 = arith.constant 0 : index
    %28 = vector.load %arg17[%c0_23, %c0_24] : memref<8x128xbf16, #tpu.memory_space<vmem>>, vector<8x128xbf16>
    tpu.vector_store %arg17[%c0_23, %c0_24], %27 {strides = array<i32>} : memref<8x128xbf16, #tpu.memory_space<vmem>>, vector<8x128xbf16>,
    %c0_25 = arith.constant 0 : index
    %c0_26 = arith.constant 0 : index
    %29 = vector.load %arg17[%c0_25, %c0_26] : memref<8x128xbf16, #tpu.memory_space<vmem>>, vector<8x128xbf16>
    %c0_i32_27 = arith.constant 0 : i32
    %c1_i32_28 = arith.constant 1 : i32
    %c1_i32_29 = arith.constant 1 : i32
    %c0_i32_30 = arith.constant 0 : i32
    %c0_i32_31 = arith.constant 0 : i32
    %30 = tpu.memref_slice %arg9[%c0_i32_27, %c0_i32_30, %c0_i32_31] : memref<1x128x128xbf16, #tpu.memory_space<any>> -> memref<1x128x128xbf16, #tpu.memory_space<any>>
    %31 = tpu.memref_squeeze %30 : memref<1x128x128xbf16, #tpu.memory_space<any>> -> memref<128x128xbf16, #tpu.memory_space<any>>
    %c0_i32_32 = arith.constant 0 : i32
    %c0_i32_33 = arith.constant 0 : i32
    %32 = tpu.memref_slice %arg16[%c1_i32_28, %c0_i32_32, %c0_i32_33] : memref<2x1024x128xbf16, #tpu.memory_space<vmem>> -> memref<1x128x128xbf16, #tpu.memory_space<vmem>>
    %33 = tpu.memref_squeeze %32 : memref<1x128x128xbf16, #tpu.memory_space<vmem>> -> memref<128x128xbf16, #tpu.memory_space<vmem>>
    %34 = tpu.memref_slice %arg19[%c1_i32_29] : memref<2x!tpu.dma_semaphore, #tpu.memory_space<semaphore_mem>> -> memref<1x!tpu.dma_semaphore, #tpu.memory_space<semaphore_mem>>
    %35 = tpu.memref_squeeze %34 : memref<1x!tpu.dma_semaphore, #tpu.memory_space<semaphore_mem>> -> memref<!tpu.dma_semaphore, #tpu.memory_space<semaphore_mem>>
    tpu.wait_dma2 semaphore(%35 : memref<!tpu.dma_semaphore, #tpu.memory_space<semaphore_mem>>) src(%31 : memref<128x128xbf16, #tpu.memory_space<any>>) dst(%33 : memref<128x128xbf16, #tpu.memory_space<vmem>>)
    %c0_i32_34 = arith.constant 0 : i32
    %c0_i32_35 = arith.constant 0 : i32
    %c0_i32_36 = arith.constant 0 : i32
    %c0_i32_37 = arith.constant 0 : i32
    %c0_i32_38 = arith.constant 0 : i32
    %36 = tpu.memref_slice %arg10[%c0_i32_34, %c0_i32_37, %c0_i32_38] : memref<1x128x128xbf16, #tpu.memory_space<any>> -> memref<1x128x128xbf16, #tpu.memory_space<any>>
    %37 = tpu.memref_squeeze %36 : memref<1x128x128xbf16, #tpu.memory_space<any>> -> memref<128x128xbf16, #tpu.memory_space<any>>
    %c0_i32_39 = arith.constant 0 : i32
    %c0_i32_40 = arith.constant 0 : i32
    %38 = tpu.memref_slice %arg16[%c0_i32_35, %c0_i32_39, %c0_i32_40] : memref<2x1024x128xbf16, #tpu.memory_space<vmem>> -> memref<1x128x128xbf16, #tpu.memory_space<vmem>>
    %39 = tpu.memref_squeeze %38 : memref<1x128x128xbf16, #tpu.memory_space<vmem>> -> memref<128x128xbf16, #tpu.memory_space<vmem>>
    %40 = tpu.memref_slice %arg19[%c0_i32_36] : memref<2x!tpu.dma_semaphore, #tpu.memory_space<semaphore_mem>> -> memref<1x!tpu.dma_semaphore, #tpu.memory_space<semaphore_mem>>
    %41 = tpu.memref_squeeze %40 : memref<1x!tpu.dma_semaphore, #tpu.memory_space<semaphore_mem>> -> memref<!tpu.dma_semaphore, #tpu.memory_space<semaphore_mem>>
    tpu.enqueue_dma source(%37 : memref<128x128xbf16, #tpu.memory_space<any>>) target(%39 : memref<128x128xbf16, #tpu.memory_space<vmem>>) target_semaphore(%41 : memref<!tpu.dma_semaphore, #tpu.memory_space<semaphore_mem>>)
    %c1 = arith.constant 1 : index
    %c0_41 = arith.constant 0 : index
    %c0_42 = arith.constant 0 : index
    %42 = vector.load %arg16[%c1, %c0_41, %c0_42] : memref<2x1024x128xbf16, #tpu.memory_space<vmem>>, vector<1x128x128xbf16>
    %43 = vector.shape_cast %42 : vector<1x128x128xbf16> to vector<128x128xbf16>
    %cst_43 = arith.constant dense<0.000000e+00> : vector<8x128xf32>
    %44 = tpu.matmul %29, %43, %cst_43 {dimension_numbers = #tpu.dot_dimension_numbers<[1], [0], [0], [1], [0, 0, 1, 1], [], []>} : vector<8x128xbf16>, vector<128x128xbf16>, vector<8x128xf32> -> vector<8x128xf32>
    %45 = vector.broadcast %4 : vector<8x1xf32> to vector<8x128xf32>
    %46 = arith.mulf %44, %45 : vector<8x128xf32>
    %cst_44 = arith.constant dense<0.000000e+00> : vector<128xf32>
    %47 = vector.multi_reduction <add>, %46, %cst_44 [0] : vector<8x128xf32> to vector<128xf32>
    %48 = vector.shape_cast %47 : vector<128xf32> to vector<1x128xf32>
    %cst_45 = arith.constant 5.000000e-01 : f32
    %49 = vector.broadcast %cst_45 : f32 to vector<1x128xf32>
    %50 = arith.mulf %48, %49 : vector<1x128xf32>
    %51 = arith.mulf %46, %44 : vector<8x128xf32>
    %cst_46 = arith.constant dense<0.000000e+00> : vector<128xf32>
    %52 = vector.multi_reduction <add>, %51, %cst_46 [0] : vector<8x128xf32> to vector<128xf32>
    %53 = vector.shape_cast %52 : vector<128xf32> to vector<1x128xf32>
    %cst_47 = arith.constant 5.000000e-01 : f32
    %54 = vector.broadcast %cst_47 : f32 to vector<1x128xf32>
    %55 = arith.mulf %53, %54 : vector<1x128xf32>
    %56 = arith.mulf %50, %50 : vector<1x128xf32>
    %57 = arith.subf %55, %56 : vector<1x128xf32>
    %cst_48 = arith.constant 0.000000e+00 : f32
    %58 = vector.broadcast %cst_48 : f32 to vector<1x128xf32>
    %59 = arith.maximumf %57, %58 : vector<1x128xf32>
    %60 = vector.broadcast %50 : vector<1x128xf32> to vector<8x128xf32>
    %61 = arith.subf %44, %60 : vector<8x128xf32>
    %cst_49 = arith.constant 9.99999974E-6 : f32
    %62 = vector.broadcast %cst_49 : f32 to vector<1x128xf32>
    %63 = arith.addf %59, %62 : vector<1x128xf32>
    %64 = math.rsqrt %63 : vector<1x128xf32>
    %65 = vector.broadcast %64 : vector<1x128xf32> to vector<8x128xf32>
    %66 = arith.mulf %61, %65 : vector<8x128xf32>
    %c0_50 = arith.constant 0 : index
    %c0_51 = arith.constant 0 : index
    %67 = vector.load %arg1[%c0_50, %c0_51] : memref<1x128xf32, #tpu.memory_space<vmem>>, vector<1x128xf32>
    %68 = vector.broadcast %67 : vector<1x128xf32> to vector<8x128xf32>
    %69 = arith.mulf %66, %68 : vector<8x128xf32>
    %c0_52 = arith.constant 0 : index
    %c0_53 = arith.constant 0 : index
    %70 = vector.load %arg2[%c0_52, %c0_53] : memref<1x128xf32, #tpu.memory_space<vmem>>, vector<1x128xf32>
    %71 = vector.broadcast %70 : vector<1x128xf32> to vector<8x128xf32>
    %72 = arith.addf %69, %71 : vector<8x128xf32>
    %cst_54 = arith.constant 0.000000e+00 : f32
    %73 = vector.broadcast %cst_54 : f32 to vector<8x128xf32>
    %74 = arith.maximumf %72, %73 : vector<8x128xf32>
    %75 = arith.truncf %74 : vector<8x128xf32> to vector<8x128xbf16>
    %c0_55 = arith.constant 0 : index
    %c0_56 = arith.constant 0 : index
    %76 = vector.load %arg18[%c0_55, %c0_56] : memref<8x128xbf16, #tpu.memory_space<vmem>>, vector<8x128xbf16>
    tpu.vector_store %arg18[%c0_55, %c0_56], %75 {strides = array<i32>} : memref<8x128xbf16, #tpu.memory_space<vmem>>, vector<8x128xbf16>,
    %c0_57 = arith.constant 0 : index
    %c0_58 = arith.constant 0 : index
    %77 = vector.load %arg18[%c0_57, %c0_58] : memref<8x128xbf16, #tpu.memory_space<vmem>>, vector<8x128xbf16>
    %c0_i32_59 = arith.constant 0 : i32
    %c0_i32_60 = arith.constant 0 : i32
    %c0_i32_61 = arith.constant 0 : i32
    %c0_i32_62 = arith.constant 0 : i32
    %c0_i32_63 = arith.constant 0 : i32
    %78 = tpu.memref_slice %arg10[%c0_i32_59, %c0_i32_62, %c0_i32_63] : memref<1x128x128xbf16, #tpu.memory_space<any>> -> memref<1x128x128xbf16, #tpu.memory_space<any>>
    %79 = tpu.memref_squeeze %78 : memref<1x128x128xbf16, #tpu.memory_space<any>> -> memref<128x128xbf16, #tpu.memory_space<any>>
    %c0_i32_64 = arith.constant 0 : i32
    %c0_i32_65 = arith.constant 0 : i32
    %80 = tpu.memref_slice %arg16[%c0_i32_60, %c0_i32_64, %c0_i32_65] : memref<2x1024x128xbf16, #tpu.memory_space<vmem>> -> memref<1x128x128xbf16, #tpu.memory_space<vmem>>
    %81 = tpu.memref_squeeze %80 : memref<1x128x128xbf16, #tpu.memory_space<vmem>> -> memref<128x128xbf16, #tpu.memory_space<vmem>>
    %82 = tpu.memref_slice %arg19[%c0_i32_61] : memref<2x!tpu.dma_semaphore, #tpu.memory_space<semaphore_mem>> -> memref<1x!tpu.dma_semaphore, #tpu.memory_space<semaphore_mem>>
    %83 = tpu.memref_squeeze %82 : memref<1x!tpu.dma_semaphore, #tpu.memory_space<semaphore_mem>> -> memref<!tpu.dma_semaphore, #tpu.memory_space<semaphore_mem>>
    tpu.wait_dma2 semaphore(%83 : memref<!tpu.dma_semaphore, #tpu.memory_space<semaphore_mem>>) src(%79 : memref<128x128xbf16, #tpu.memory_space<any>>) dst(%81 : memref<128x128xbf16, #tpu.memory_space<vmem>>)
    %c0_i32_66 = arith.constant 0 : i32
    %c1_i32_67 = arith.constant 1 : i32
    %c1_i32_68 = arith.constant 1 : i32
    %c0_i32_69 = arith.constant 0 : i32
    %c0_i32_70 = arith.constant 0 : i32
    %84 = tpu.memref_slice %arg11[%c0_i32_66, %c0_i32_69, %c0_i32_70] : memref<1x128x128xbf16, #tpu.memory_space<any>> -> memref<1x128x128xbf16, #tpu.memory_space<any>>
    %85 = tpu.memref_squeeze %84 : memref<1x128x128xbf16, #tpu.memory_space<any>> -> memref<128x128xbf16, #tpu.memory_space<any>>
    %c0_i32_71 = arith.constant 0 : i32
    %c0_i32_72 = arith.constant 0 : i32
    %86 = tpu.memref_slice %arg16[%c1_i32_67, %c0_i32_71, %c0_i32_72] : memref<2x1024x128xbf16, #tpu.memory_space<vmem>> -> memref<1x128x128xbf16, #tpu.memory_space<vmem>>
    %87 = tpu.memref_squeeze %86 : memref<1x128x128xbf16, #tpu.memory_space<vmem>> -> memref<128x128xbf16, #tpu.memory_space<vmem>>
    %88 = tpu.memref_slice %arg19[%c1_i32_68] : memref<2x!tpu.dma_semaphore, #tpu.memory_space<semaphore_mem>> -> memref<1x!tpu.dma_semaphore, #tpu.memory_space<semaphore_mem>>
    %89 = tpu.memref_squeeze %88 : memref<1x!tpu.dma_semaphore, #tpu.memory_space<semaphore_mem>> -> memref<!tpu.dma_semaphore, #tpu.memory_space<semaphore_mem>>
    tpu.enqueue_dma source(%85 : memref<128x128xbf16, #tpu.memory_space<any>>) target(%87 : memref<128x128xbf16, #tpu.memory_space<vmem>>) target_semaphore(%89 : memref<!tpu.dma_semaphore, #tpu.memory_space<semaphore_mem>>)
    %c0_73 = arith.constant 0 : index
    %c0_74 = arith.constant 0 : index
    %c0_75 = arith.constant 0 : index
    %90 = vector.load %arg16[%c0_73, %c0_74, %c0_75] : memref<2x1024x128xbf16, #tpu.memory_space<vmem>>, vector<1x128x128xbf16>
    %91 = vector.shape_cast %90 : vector<1x128x128xbf16> to vector<128x128xbf16>
    %cst_76 = arith.constant dense<0.000000e+00> : vector<8x128xf32>
    %92 = tpu.matmul %77, %91, %cst_76 {dimension_numbers = #tpu.dot_dimension_numbers<[1], [0], [0], [1], [0, 0, 1, 1], [], []>} : vector<8x128xbf16>, vector<128x128xbf16>, vector<8x128xf32> -> vector<8x128xf32>
    %93 = vector.broadcast %4 : vector<8x1xf32> to vector<8x128xf32>
    %94 = arith.mulf %92, %93 : vector<8x128xf32>
    %cst_77 = arith.constant dense<0.000000e+00> : vector<128xf32>
    %95 = vector.multi_reduction <add>, %94, %cst_77 [0] : vector<8x128xf32> to vector<128xf32>
    %96 = vector.shape_cast %95 : vector<128xf32> to vector<1x128xf32>
    %cst_78 = arith.constant 5.000000e-01 : f32
    %97 = vector.broadcast %cst_78 : f32 to vector<1x128xf32>
    %98 = arith.mulf %96, %97 : vector<1x128xf32>
    %99 = arith.mulf %94, %92 : vector<8x128xf32>
    %cst_79 = arith.constant dense<0.000000e+00> : vector<128xf32>
    %100 = vector.multi_reduction <add>, %99, %cst_79 [0] : vector<8x128xf32> to vector<128xf32>
    %101 = vector.shape_cast %100 : vector<128xf32> to vector<1x128xf32>
    %cst_80 = arith.constant 5.000000e-01 : f32
    %102 = vector.broadcast %cst_80 : f32 to vector<1x128xf32>
    %103 = arith.mulf %101, %102 : vector<1x128xf32>
    %104 = arith.mulf %98, %98 : vector<1x128xf32>
    %105 = arith.subf %103, %104 : vector<1x128xf32>
    %cst_81 = arith.constant 0.000000e+00 : f32
    %106 = vector.broadcast %cst_81 : f32 to vector<1x128xf32>
    %107 = arith.maximumf %105, %106 : vector<1x128xf32>
    %108 = vector.broadcast %98 : vector<1x128xf32> to vector<8x128xf32>
    %109 = arith.subf %92, %108 : vector<8x128xf32>
    %cst_82 = arith.constant 9.99999974E-6 : f32
    %110 = vector.broadcast %cst_82 : f32 to vector<1x128xf32>
    %111 = arith.addf %107, %110 : vector<1x128xf32>
    %112 = math.rsqrt %111 : vector<1x128xf32>
    %113 = vector.broadcast %112 : vector<1x128xf32> to vector<8x128xf32>
    %114 = arith.mulf %109, %113 : vector<8x128xf32>
    %c0_83 = arith.constant 0 : index
    %c0_84 = arith.constant 0 : index
    %115 = vector.load %arg3[%c0_83, %c0_84] : memref<1x128xf32, #tpu.memory_space<vmem>>, vector<1x128xf32>
    %116 = vector.broadcast %115 : vector<1x128xf32> to vector<8x128xf32>
    %117 = arith.mulf %114, %116 : vector<8x128xf32>
    %c0_85 = arith.constant 0 : index
    %c0_86 = arith.constant 0 : index
    %118 = vector.load %arg4[%c0_85, %c0_86] : memref<1x128xf32, #tpu.memory_space<vmem>>, vector<1x128xf32>
    %119 = vector.broadcast %118 : vector<1x128xf32> to vector<8x128xf32>
    %120 = arith.addf %117, %119 : vector<8x128xf32>
    %cst_87 = arith.constant 0.000000e+00 : f32
    %121 = vector.broadcast %cst_87 : f32 to vector<8x128xf32>
    %122 = arith.maximumf %120, %121 : vector<8x128xf32>
    %123 = arith.truncf %122 : vector<8x128xf32> to vector<8x128xbf16>
    %c0_88 = arith.constant 0 : index
    %c0_89 = arith.constant 0 : index
    %124 = vector.load %arg17[%c0_88, %c0_89] : memref<8x128xbf16, #tpu.memory_space<vmem>>, vector<8x128xbf16>
    tpu.vector_store %arg17[%c0_88, %c0_89], %123 {strides = array<i32>} : memref<8x128xbf16, #tpu.memory_space<vmem>>, vector<8x128xbf16>,
    %c0_90 = arith.constant 0 : index
    %c0_91 = arith.constant 0 : index
    %125 = vector.load %arg17[%c0_90, %c0_91] : memref<8x128xbf16, #tpu.memory_space<vmem>>, vector<8x128xbf16>
    %c0_i32_92 = arith.constant 0 : i32
    %c1_i32_93 = arith.constant 1 : i32
    %c1_i32_94 = arith.constant 1 : i32
    %c0_i32_95 = arith.constant 0 : i32
    %c0_i32_96 = arith.constant 0 : i32
    %126 = tpu.memref_slice %arg11[%c0_i32_92, %c0_i32_95, %c0_i32_96] : memref<1x128x128xbf16, #tpu.memory_space<any>> -> memref<1x128x128xbf16, #tpu.memory_space<any>>
    %127 = tpu.memref_squeeze %126 : memref<1x128x128xbf16, #tpu.memory_space<any>> -> memref<128x128xbf16, #tpu.memory_space<any>>
    %c0_i32_97 = arith.constant 0 : i32
    %c0_i32_98 = arith.constant 0 : i32
    %128 = tpu.memref_slice %arg16[%c1_i32_93, %c0_i32_97, %c0_i32_98] : memref<2x1024x128xbf16, #tpu.memory_space<vmem>> -> memref<1x128x128xbf16, #tpu.memory_space<vmem>>
    %129 = tpu.memref_squeeze %128 : memref<1x128x128xbf16, #tpu.memory_space<vmem>> -> memref<128x128xbf16, #tpu.memory_space<vmem>>
    %130 = tpu.memref_slice %arg19[%c1_i32_94] : memref<2x!tpu.dma_semaphore, #tpu.memory_space<semaphore_mem>> -> memref<1x!tpu.dma_semaphore, #tpu.memory_space<semaphore_mem>>
    %131 = tpu.memref_squeeze %130 : memref<1x!tpu.dma_semaphore, #tpu.memory_space<semaphore_mem>> -> memref<!tpu.dma_semaphore, #tpu.memory_space<semaphore_mem>>
    tpu.wait_dma2 semaphore(%131 : memref<!tpu.dma_semaphore, #tpu.memory_space<semaphore_mem>>) src(%127 : memref<128x128xbf16, #tpu.memory_space<any>>) dst(%129 : memref<128x128xbf16, #tpu.memory_space<vmem>>)
    %c0_i32_99 = arith.constant 0 : i32
    %c0_i32_100 = arith.constant 0 : i32
    %c0_i32_101 = arith.constant 0 : i32
    %c0_i32_102 = arith.constant 0 : i32
    %c0_i32_103 = arith.constant 0 : i32
    %132 = tpu.memref_slice %arg12[%c0_i32_99, %c0_i32_102, %c0_i32_103] : memref<1x128x128xbf16, #tpu.memory_space<any>> -> memref<1x128x128xbf16, #tpu.memory_space<any>>
    %133 = tpu.memref_squeeze %132 : memref<1x128x128xbf16, #tpu.memory_space<any>> -> memref<128x128xbf16, #tpu.memory_space<any>>
    %c0_i32_104 = arith.constant 0 : i32
    %c0_i32_105 = arith.constant 0 : i32
    %134 = tpu.memref_slice %arg16[%c0_i32_100, %c0_i32_104, %c0_i32_105] : memref<2x1024x128xbf16, #tpu.memory_space<vmem>> -> memref<1x128x128xbf16, #tpu.memory_space<vmem>>
    %135 = tpu.memref_squeeze %134 : memref<1x128x128xbf16, #tpu.memory_space<vmem>> -> memref<128x128xbf16, #tpu.memory_space<vmem>>
    %136 = tpu.memref_slice %arg19[%c0_i32_101] : memref<2x!tpu.dma_semaphore, #tpu.memory_space<semaphore_mem>> -> memref<1x!tpu.dma_semaphore, #tpu.memory_space<semaphore_mem>>
    %137 = tpu.memref_squeeze %136 : memref<1x!tpu.dma_semaphore, #tpu.memory_space<semaphore_mem>> -> memref<!tpu.dma_semaphore, #tpu.memory_space<semaphore_mem>>
    tpu.enqueue_dma source(%133 : memref<128x128xbf16, #tpu.memory_space<any>>) target(%135 : memref<128x128xbf16, #tpu.memory_space<vmem>>) target_semaphore(%137 : memref<!tpu.dma_semaphore, #tpu.memory_space<semaphore_mem>>)
    %c1_106 = arith.constant 1 : index
    %c0_107 = arith.constant 0 : index
    %c0_108 = arith.constant 0 : index
    %138 = vector.load %arg16[%c1_106, %c0_107, %c0_108] : memref<2x1024x128xbf16, #tpu.memory_space<vmem>>, vector<1x128x128xbf16>
    %139 = vector.shape_cast %138 : vector<1x128x128xbf16> to vector<128x128xbf16>
    %cst_109 = arith.constant dense<0.000000e+00> : vector<8x128xf32>
    %140 = tpu.matmul %125, %139, %cst_109 {dimension_numbers = #tpu.dot_dimension_numbers<[1], [0], [0], [1], [0, 0, 1, 1], [], []>} : vector<8x128xbf16>, vector<128x128xbf16>, vector<8x128xf32> -> vector<8x128xf32>
    %141 = vector.broadcast %4 : vector<8x1xf32> to vector<8x128xf32>
    %142 = arith.mulf %140, %141 : vector<8x128xf32>
    %cst_110 = arith.constant dense<0.000000e+00> : vector<128xf32>
    %143 = vector.multi_reduction <add>, %142, %cst_110 [0] : vector<8x128xf32> to vector<128xf32>
    %144 = vector.shape_cast %143 : vector<128xf32> to vector<1x128xf32>
    %cst_111 = arith.constant 5.000000e-01 : f32
    %145 = vector.broadcast %cst_111 : f32 to vector<1x128xf32>
    %146 = arith.mulf %144, %145 : vector<1x128xf32>
    %147 = arith.mulf %142, %140 : vector<8x128xf32>
    %cst_112 = arith.constant dense<0.000000e+00> : vector<128xf32>
    %148 = vector.multi_reduction <add>, %147, %cst_112 [0] : vector<8x128xf32> to vector<128xf32>
    %149 = vector.shape_cast %148 : vector<128xf32> to vector<1x128xf32>
    %cst_113 = arith.constant 5.000000e-01 : f32
    %150 = vector.broadcast %cst_113 : f32 to vector<1x128xf32>
    %151 = arith.mulf %149, %150 : vector<1x128xf32>
    %152 = arith.mulf %146, %146 : vector<1x128xf32>
    %153 = arith.subf %151, %152 : vector<1x128xf32>
    %cst_114 = arith.constant 0.000000e+00 : f32
    %154 = vector.broadcast %cst_114 : f32 to vector<1x128xf32>
    %155 = arith.maximumf %153, %154 : vector<1x128xf32>
    %156 = vector.broadcast %146 : vector<1x128xf32> to vector<8x128xf32>
    %157 = arith.subf %140, %156 : vector<8x128xf32>
    %cst_115 = arith.constant 9.99999974E-6 : f32
    %158 = vector.broadcast %cst_115 : f32 to vector<1x128xf32>
    %159 = arith.addf %155, %158 : vector<1x128xf32>
    %160 = math.rsqrt %159 : vector<1x128xf32>
    %161 = vector.broadcast %160 : vector<1x128xf32> to vector<8x128xf32>
    %162 = arith.mulf %157, %161 : vector<8x128xf32>
    %c0_116 = arith.constant 0 : index
    %c0_117 = arith.constant 0 : index
    %163 = vector.load %arg14[%c0_116, %c0_117] : memref<8x128xf32, #tpu.memory_space<vmem>>, vector<8x128xf32>
    tpu.vector_store %arg14[%c0_116, %c0_117], %162 {strides = array<i32>} : memref<8x128xf32, #tpu.memory_space<vmem>>, vector<8x128xf32>,
    %164 = arith.truncf %162 : vector<8x128xf32> to vector<8x128xbf16>
    %c0_118 = arith.constant 0 : index
    %c0_119 = arith.constant 0 : index
    %165 = vector.load %arg18[%c0_118, %c0_119] : memref<8x128xbf16, #tpu.memory_space<vmem>>, vector<8x128xbf16>
    tpu.vector_store %arg18[%c0_118, %c0_119], %164 {strides = array<i32>} : memref<8x128xbf16, #tpu.memory_space<vmem>>, vector<8x128xbf16>,
    %c0_120 = arith.constant 0 : index
    %c0_121 = arith.constant 0 : index
    %166 = vector.load %arg18[%c0_120, %c0_121] : memref<8x128xbf16, #tpu.memory_space<vmem>>, vector<8x128xbf16>
    %c0_i32_122 = arith.constant 0 : i32
    %c0_i32_123 = arith.constant 0 : i32
    %c0_i32_124 = arith.constant 0 : i32
    %c0_i32_125 = arith.constant 0 : i32
    %c0_i32_126 = arith.constant 0 : i32
    %167 = tpu.memref_slice %arg12[%c0_i32_122, %c0_i32_125, %c0_i32_126] : memref<1x128x128xbf16, #tpu.memory_space<any>> -> memref<1x128x128xbf16, #tpu.memory_space<any>>
    %168 = tpu.memref_squeeze %167 : memref<1x128x128xbf16, #tpu.memory_space<any>> -> memref<128x128xbf16, #tpu.memory_space<any>>
    %c0_i32_127 = arith.constant 0 : i32
    %c0_i32_128 = arith.constant 0 : i32
    %169 = tpu.memref_slice %arg16[%c0_i32_123, %c0_i32_127, %c0_i32_128] : memref<2x1024x128xbf16, #tpu.memory_space<vmem>> -> memref<1x128x128xbf16, #tpu.memory_space<vmem>>
    %170 = tpu.memref_squeeze %169 : memref<1x128x128xbf16, #tpu.memory_space<vmem>> -> memref<128x128xbf16, #tpu.memory_space<vmem>>
    %171 = tpu.memref_slice %arg19[%c0_i32_124] : memref<2x!tpu.dma_semaphore, #tpu.memory_space<semaphore_mem>> -> memref<1x!tpu.dma_semaphore, #tpu.memory_space<semaphore_mem>>
    %172 = tpu.memref_squeeze %171 : memref<1x!tpu.dma_semaphore, #tpu.memory_space<semaphore_mem>> -> memref<!tpu.dma_semaphore, #tpu.memory_space<semaphore_mem>>
    tpu.wait_dma2 semaphore(%172 : memref<!tpu.dma_semaphore, #tpu.memory_space<semaphore_mem>>) src(%168 : memref<128x128xbf16, #tpu.memory_space<any>>) dst(%170 : memref<128x128xbf16, #tpu.memory_space<vmem>>)
    %c0_i32_129 = arith.constant 0 : i32
    %c1_i32_130 = arith.constant 1 : i32
    %c1_i32_131 = arith.constant 1 : i32
    %c0_i32_132 = arith.constant 0 : i32
    %c0_i32_133 = arith.constant 0 : i32
    %173 = tpu.memref_slice %arg13[%c0_i32_129, %c0_i32_132, %c0_i32_133] : memref<1x128x128xbf16, #tpu.memory_space<any>> -> memref<1x128x128xbf16, #tpu.memory_space<any>>
    %174 = tpu.memref_squeeze %173 : memref<1x128x128xbf16, #tpu.memory_space<any>> -> memref<128x128xbf16, #tpu.memory_space<any>>
    %c0_i32_134 = arith.constant 0 : i32
    %c0_i32_135 = arith.constant 0 : i32
    %175 = tpu.memref_slice %arg16[%c1_i32_130, %c0_i32_134, %c0_i32_135] : memref<2x1024x128xbf16, #tpu.memory_space<vmem>> -> memref<1x128x128xbf16, #tpu.memory_space<vmem>>
    %176 = tpu.memref_squeeze %175 : memref<1x128x128xbf16, #tpu.memory_space<vmem>> -> memref<128x128xbf16, #tpu.memory_space<vmem>>
    %177 = tpu.memref_slice %arg19[%c1_i32_131] : memref<2x!tpu.dma_semaphore, #tpu.memory_space<semaphore_mem>> -> memref<1x!tpu.dma_semaphore, #tpu.memory_space<semaphore_mem>>
    %178 = tpu.memref_squeeze %177 : memref<1x!tpu.dma_semaphore, #tpu.memory_space<semaphore_mem>> -> memref<!tpu.dma_semaphore, #tpu.memory_space<semaphore_mem>>
    tpu.enqueue_dma source(%174 : memref<128x128xbf16, #tpu.memory_space<any>>) target(%176 : memref<128x128xbf16, #tpu.memory_space<vmem>>) target_semaphore(%178 : memref<!tpu.dma_semaphore, #tpu.memory_space<semaphore_mem>>)
    %c0_136 = arith.constant 0 : index
    %c0_137 = arith.constant 0 : index
    %c0_138 = arith.constant 0 : index
    %179 = vector.load %arg16[%c0_136, %c0_137, %c0_138] : memref<2x1024x128xbf16, #tpu.memory_space<vmem>>, vector<1x128x128xbf16>
    %180 = vector.shape_cast %179 : vector<1x128x128xbf16> to vector<128x128xbf16>
    %cst_139 = arith.constant dense<0.000000e+00> : vector<8x128xf32>
    %181 = tpu.matmul %166, %180, %cst_139 {dimension_numbers = #tpu.dot_dimension_numbers<[1], [0], [0], [1], [0, 0, 1, 1], [], []>} : vector<8x128xbf16>, vector<128x128xbf16>, vector<8x128xf32> -> vector<8x128xf32>
    %182 = vector.broadcast %4 : vector<8x1xf32> to vector<8x128xf32>
    %183 = arith.mulf %181, %182 : vector<8x128xf32>
    %cst_140 = arith.constant dense<0.000000e+00> : vector<128xf32>
    %184 = vector.multi_reduction <add>, %183, %cst_140 [0] : vector<8x128xf32> to vector<128xf32>
    %185 = vector.shape_cast %184 : vector<128xf32> to vector<1x128xf32>
    %cst_141 = arith.constant 5.000000e-01 : f32
    %186 = vector.broadcast %cst_141 : f32 to vector<1x128xf32>
    %187 = arith.mulf %185, %186 : vector<1x128xf32>
    %188 = arith.mulf %183, %181 : vector<8x128xf32>
    %cst_142 = arith.constant dense<0.000000e+00> : vector<128xf32>
    %189 = vector.multi_reduction <add>, %188, %cst_142 [0] : vector<8x128xf32> to vector<128xf32>
    %190 = vector.shape_cast %189 : vector<128xf32> to vector<1x128xf32>
    %cst_143 = arith.constant 5.000000e-01 : f32
    %191 = vector.broadcast %cst_143 : f32 to vector<1x128xf32>
    %192 = arith.mulf %190, %191 : vector<1x128xf32>
    %193 = arith.mulf %187, %187 : vector<1x128xf32>
    %194 = arith.subf %192, %193 : vector<1x128xf32>
    %cst_144 = arith.constant 0.000000e+00 : f32
    %195 = vector.broadcast %cst_144 : f32 to vector<1x128xf32>
    %196 = arith.maximumf %194, %195 : vector<1x128xf32>
    %197 = vector.broadcast %187 : vector<1x128xf32> to vector<8x128xf32>
    %198 = arith.subf %181, %197 : vector<8x128xf32>
    %cst_145 = arith.constant 9.99999974E-6 : f32
    %199 = vector.broadcast %cst_145 : f32 to vector<1x128xf32>
    %200 = arith.addf %196, %199 : vector<1x128xf32>
    %201 = math.rsqrt %200 : vector<1x128xf32>
    %202 = vector.broadcast %201 : vector<1x128xf32> to vector<8x128xf32>
    %203 = arith.mulf %198, %202 : vector<8x128xf32>
    %c0_146 = arith.constant 0 : index
    %c0_147 = arith.constant 0 : index
    %204 = vector.load %arg5[%c0_146, %c0_147] : memref<1x128xf32, #tpu.memory_space<vmem>>, vector<1x128xf32>
    %205 = vector.broadcast %204 : vector<1x128xf32> to vector<8x128xf32>
    %206 = arith.mulf %203, %205 : vector<8x128xf32>
    %c0_148 = arith.constant 0 : index
    %c0_149 = arith.constant 0 : index
    %207 = vector.load %arg6[%c0_148, %c0_149] : memref<1x128xf32, #tpu.memory_space<vmem>>, vector<1x128xf32>
    %208 = vector.broadcast %207 : vector<1x128xf32> to vector<8x128xf32>
    %209 = arith.addf %206, %208 : vector<8x128xf32>
    %cst_150 = arith.constant 0.000000e+00 : f32
    %210 = vector.broadcast %cst_150 : f32 to vector<8x128xf32>
    %211 = arith.maximumf %209, %210 : vector<8x128xf32>
    %212 = arith.truncf %211 : vector<8x128xf32> to vector<8x128xbf16>
    %c0_151 = arith.constant 0 : index
    %c0_152 = arith.constant 0 : index
    %213 = vector.load %arg17[%c0_151, %c0_152] : memref<8x128xbf16, #tpu.memory_space<vmem>>, vector<8x128xbf16>
    tpu.vector_store %arg17[%c0_151, %c0_152], %212 {strides = array<i32>} : memref<8x128xbf16, #tpu.memory_space<vmem>>, vector<8x128xbf16>,
    %c0_153 = arith.constant 0 : index
    %c0_154 = arith.constant 0 : index
    %214 = vector.load %arg17[%c0_153, %c0_154] : memref<8x128xbf16, #tpu.memory_space<vmem>>, vector<8x128xbf16>
    %c0_i32_155 = arith.constant 0 : i32
    %c1_i32_156 = arith.constant 1 : i32
    %c1_i32_157 = arith.constant 1 : i32
    %c0_i32_158 = arith.constant 0 : i32
    %c0_i32_159 = arith.constant 0 : i32
    %215 = tpu.memref_slice %arg13[%c0_i32_155, %c0_i32_158, %c0_i32_159] : memref<1x128x128xbf16, #tpu.memory_space<any>> -> memref<1x128x128xbf16, #tpu.memory_space<any>>
    %216 = tpu.memref_squeeze %215 : memref<1x128x128xbf16, #tpu.memory_space<any>> -> memref<128x128xbf16, #tpu.memory_space<any>>
    %c0_i32_160 = arith.constant 0 : i32
    %c0_i32_161 = arith.constant 0 : i32
    %217 = tpu.memref_slice %arg16[%c1_i32_156, %c0_i32_160, %c0_i32_161] : memref<2x1024x128xbf16, #tpu.memory_space<vmem>> -> memref<1x128x128xbf16, #tpu.memory_space<vmem>>
    %218 = tpu.memref_squeeze %217 : memref<1x128x128xbf16, #tpu.memory_space<vmem>> -> memref<128x128xbf16, #tpu.memory_space<vmem>>
    %219 = tpu.memref_slice %arg19[%c1_i32_157] : memref<2x!tpu.dma_semaphore, #tpu.memory_space<semaphore_mem>> -> memref<1x!tpu.dma_semaphore, #tpu.memory_space<semaphore_mem>>
    %220 = tpu.memref_squeeze %219 : memref<1x!tpu.dma_semaphore, #tpu.memory_space<semaphore_mem>> -> memref<!tpu.dma_semaphore, #tpu.memory_space<semaphore_mem>>
    tpu.wait_dma2 semaphore(%220 : memref<!tpu.dma_semaphore, #tpu.memory_space<semaphore_mem>>) src(%216 : memref<128x128xbf16, #tpu.memory_space<any>>) dst(%218 : memref<128x128xbf16, #tpu.memory_space<vmem>>)
    %c1_162 = arith.constant 1 : index
    %c0_163 = arith.constant 0 : index
    %c0_164 = arith.constant 0 : index
    %221 = vector.load %arg16[%c1_162, %c0_163, %c0_164] : memref<2x1024x128xbf16, #tpu.memory_space<vmem>>, vector<1x128x128xbf16>
    %222 = vector.shape_cast %221 : vector<1x128x128xbf16> to vector<128x128xbf16>
    %cst_165 = arith.constant dense<0.000000e+00> : vector<8x128xf32>
    %223 = tpu.matmul %214, %222, %cst_165 {dimension_numbers = #tpu.dot_dimension_numbers<[1], [0], [0], [1], [0, 0, 1, 1], [], []>} : vector<8x128xbf16>, vector<128x128xbf16>, vector<8x128xf32> -> vector<8x128xf32>
    %c0_166 = arith.constant 0 : index
    %c0_167 = arith.constant 0 : index
    %224 = vector.load %arg7[%c0_166, %c0_167] : memref<1x128xf32, #tpu.memory_space<vmem>>, vector<1x128xf32>
    %225 = vector.broadcast %224 : vector<1x128xf32> to vector<8x128xf32>
    %226 = arith.addf %223, %225 : vector<8x128xf32>
    %c0_168 = arith.constant 0 : index
    %c0_169 = arith.constant 0 : index
    %227 = vector.load %arg15[%c0_168, %c0_169] : memref<8x128xf32, #tpu.memory_space<vmem>>, vector<8x128xf32>
    tpu.vector_store %arg15[%c0_168, %c0_169], %226 {strides = array<i32>} : memref<8x128xf32, #tpu.memory_space<vmem>>, vector<8x128xf32>,
    return
  }
}

</mosaic_0001>

<bundles_post_ra>
// kernel: tpu_custom_call.1
= control target key start
LH: loop header
LB: loop body
LE: loop exit
PB: predicated region body
PF: predicated region fallthrough
CT: control target
= control target key end

     0   :  { %21 = vsyncpa [#allocation7], 0  ;;  %s2402_s0 = inlined_call_operand.hbm [shape: bf16[8,1024], index: 0, kind: input, shape index: {}]   ;;  %s2403_s1 = inlined_call_operand.hbm [shape: f32[1,128], index: 1, kind: input, shape index: {}]   ;;  %s2404_s2 = inlined_call_operand.vmem [shape: f32[1,128], index: 2, kind: input, shape index: {}]   ;;  %s2405_s3 = inlined_call_operand.vmem [shape: f32[1,128], index: 3, kind: input, shape index: {}]   ;;  %s2406_s4 = inlined_call_operand.vmem [shape: f32[1,128], index: 4, kind: input, shape index: {}]   ;;  %s2407_s5 = inlined_call_operand.vmem [shape: f32[1,128], index: 5, kind: input, shape index: {}]   ;;  %s2408_s6 = inlined_call_operand.vmem [shape: f32[1,128], index: 6, kind: input, shape index: {}]   ;;  %s2409_s7 = inlined_call_operand.vmem [shape: f32[1,128], index: 7, kind: input, shape index: {}]   ;;  %s2410_s8 = inlined_call_operand.hbm [shape: bf16[1,1024,128], index: 8, kind: input, shape index: {}]   ;;  %s2411_s9 = inlined_call_operand.hbm [shape: bf16[1,128,128], index: 9, kind: input, shape index: {}]   ;;  %s2412_s10 = inlined_call_operand.hbm [shape: bf16[1,128,128], index: 10, kind: input, shape index: {}]   ;;  %s2413_s11 = inlined_call_operand.hbm [shape: bf16[1,128,128], index: 11, kind: input, shape index: {}]   ;;  %s2414_s12 = inlined_call_operand.hbm [shape: bf16[1,128,128], index: 12, kind: input, shape index: {}]   ;;  %s2415_s13 = inlined_call_operand.hbm [shape: bf16[1,128,128], index: 13, kind: input, shape index: {}]   ;;  %s2416_s14 = inlined_call_operand.hbm [shape: f32[8,128], index: 14, kind: output, shape index: {0}]   ;;  %s2417_s15 = inlined_call_operand.hbm [shape: f32[8,128], index: 15, kind: output, shape index: {1}]  }
   0x1   :  { %22 = vsyncpa [#allocation10], 0 }
   0x2   :  { %23 = vsyncpa [#allocation8], 0 }
   0x3   :  { %24 = vsyncpa [#allocation13], 0  ;;  %s30_s20 = sshll.u32 %s2402_s0, 4  ;;  %s2235_s21 = smov [#allocation6]   ;;  %s31_s20 = int_to_ptr.hbm [resolvable:$true] %s30_s20 }
   0x4   :  { %s32_s22 = sshll.u32 %s2235_s21, 4  ;;  %s41_s25 = sshll.u32 %s2403_s1, 4  ;;  %s33_s22 = int_to_ptr.vmem [resolvable:$true] %s32_s22  ;;  %s42_s25 = int_to_ptr.hbm [resolvable:$true] %s41_s25 }
   0x5   :  { %35 = dma.hbm_to_vmem [thread:$0]  %s31_s20, 512, %s33_s22, [#allocation7]  }
   0x6   :  { %s2236_s26 = smov [#allocation9]  }
   0x7   :  { %s43_s27 = sshll.u32 %s2236_s26, 4  ;;  %s44_s27 = int_to_ptr.vmem [resolvable:$true] %s43_s27 }
   0x8   :  { %46 = dma.hbm_to_vmem [thread:$0]  %s42_s25, 16, %s44_s27, [#allocation10]  }
   0x9   :  { %2215 = dma.done.wait [#allocation7], 512  }
   0xa   :  { %2216 = vsyncadd [#allocation7], 4294966784 }
   0xb   :  { %2217 = dma.done.wait [#allocation10], 16  }
   0xc   :  { %2218 = vsyncadd [#allocation10], 4294967280  ;;  %v67_v0 = vlaneseq  ;;  %s83_s29 = sshll.u32 %s2410_s8, 4  ;;  %s2237_s30 = smov [#allocation2]   ;;  %v2238_v2 = vmov 0.0   ;;  %v2336_v4 = vld [vmem:[#allocation6] sm:$0xff]  ;;  %s84_s29 = int_to_ptr.hbm [resolvable:$true] %s83_s29 }
   0xd   :  { %s85_s16 = sshll.u32 %s2237_s30, 4  ;;  %v2338_v5 = vld [vmem:[#allocation6 + $0x8] sm:$0xff]  ;;  %v2340_v6 = vld [vmem:[#allocation6 + $0x10] sm:$0xff]  ;;  %v2342_v7 = vld [vmem:[#allocation6 + $0x18] sm:$0xff]  ;;  %s2331_s16 = int_to_ptr.vmem [resolvable:$true] %s85_s16 }
   0xe   :  { %v68_v1 = vshrl.u32 %v67_v0, 7  ;;  %88 = dma.hbm_to_vmem [thread:$0]  %s84_s29, 8192, %s2331_s16, [#allocation5] }
  0x10   :  { %vm69_vm0 = vcmp.lt.s32.totalorder %v68_v1, 2 }
  0x11   :  { %v2334_v3 = vsel %vm69_vm0, 1.0, %v2238_v2 }
  0x12   :  { %2219 = dma.done.wait [#allocation5], 8192 }
  0x13   :  { %2220 = vsyncadd [#allocation5], 4294959104  ;;  %s102_s17 = sshll.u32 %s2411_s9, 4  ;;  %s2239_s18 = smov [#allocation2 + $0x200]   ;;  %v242_v38 = vunpack.c.l.b16 %v2338_v5  ;;  %v240_v39 = vunpack.c.l.b16 %v2336_v4  ;;  %v243_v42 = vunpack.c.h.b16 %v2338_v5  ;;  %v241_v43 = vunpack.c.h.b16 %v2336_v4  ;;  %s103_s17 = int_to_ptr.hbm [resolvable:$true] %s102_s17 }
  0x14   :  { %s104_s19 = sshll.u32 %s2239_s18, 4  ;;  %s2347_s19 = int_to_ptr.vmem [resolvable:$true] %s104_s19 }
  0x15   :  { %107 = dma.hbm_to_vmem [thread:$0]  %s103_s17, 1024, %s2347_s19, [#allocation5 + $0x1]  ;;  %v250_v48 = vpack.c.b16 %v242_v38, %v242_v38  ;;  %v248_v49 = vpack.c.b16 %v240_v39, %v240_v39  ;;  %v251_v50 = vpack.c.b16 %v243_v42, %v243_v42  ;;  %v249_v51 = vpack.c.b16 %v241_v43, %v241_v43 }
  0x16   :  { %v1856_v8 = vld [vmem:[#allocation2 + $0x38] sm:$0xff]  ;;  %v1855_v12 = vld [vmem:[#allocation2 + $0x30] sm:$0xff]  ;;  %v1854_v16 = vld [vmem:[#allocation2 + $0x28] sm:$0xff] }
  0x17   :  { %v1864_v9 = vld [vmem:[#allocation2 + $0x78] sm:$0xff]  ;;  %648 = vmatpush.bf16.msra.mxu0 %v1856_v8  ;;  %v1863_v13 = vld [vmem:[#allocation2 + $0x70] sm:$0xff]  ;;  %v1862_v17 = vld [vmem:[#allocation2 + $0x68] sm:$0xff] }
  0x18   :  { %v1872_v10 = vld [vmem:[#allocation2 + $0xb8] sm:$0xff]  ;;  %661 = vmatpush.bf16.msra.mxu1 %v1864_v9  ;;  %v1871_v14 = vld [vmem:[#allocation2 + $0xb0] sm:$0xff]  ;;  %v1870_v18 = vld [vmem:[#allocation2 + $0xa8] sm:$0xff] }
  0x19   :  { %v1880_v11 = vld [vmem:[#allocation2 + $0xf8] sm:$0xff]  ;;  %674 = vmatpush.bf16.msra.mxu2 %v1872_v10  ;;  %v1879_v15 = vld [vmem:[#allocation2 + $0xf0] sm:$0xff]  ;;  %v1878_v19 = vld [vmem:[#allocation2 + $0xe8] sm:$0xff] }
  0x1a   :  { %687 = vmatpush.bf16.msra.mxu3 %v1880_v11  ;;  %v1853_v20 = vld [vmem:[#allocation2 + $0x20] sm:$0xff]  ;;  %v1852_v24 = vld [vmem:[#allocation2 + $0x18] sm:$0xff]  ;;  %v1851_v28 = vld [vmem:[#allocation2 + $0x10] sm:$0xff] }
  0x1b   :  { %649 = vmatpush.bf16.msra.mxu0 %v1855_v12  ;;  %v1861_v21 = vld [vmem:[#allocation2 + $0x60] sm:$0xff]  ;;  %v1860_v25 = vld [vmem:[#allocation2 + $0x58] sm:$0xff]  ;;  %v1859_v29 = vld [vmem:[#allocation2 + $0x50] sm:$0xff] }
  0x1c   :  { %662 = vmatpush.bf16.msra.mxu1 %v1863_v13  ;;  %v1869_v22 = vld [vmem:[#allocation2 + $0xa0] sm:$0xff]  ;;  %v1868_v26 = vld [vmem:[#allocation2 + $0x98] sm:$0xff]  ;;  %v1867_v30 = vld [vmem:[#allocation2 + $0x90] sm:$0xff] }
  0x1d   :  { %675 = vmatpush.bf16.msra.mxu2 %v1871_v14  ;;  %v1877_v23 = vld [vmem:[#allocation2 + $0xe0] sm:$0xff]  ;;  %v1876_v27 = vld [vmem:[#allocation2 + $0xd8] sm:$0xff]  ;;  %v1875_v31 = vld [vmem:[#allocation2 + $0xd0] sm:$0xff] }
  0x1e   :  { %688 = vmatpush.bf16.msra.mxu3 %v1879_v15  ;;  %v1850_v32 = vld [vmem:[#allocation2 + $0x8] sm:$0xff]  ;;  %v1849_v36 = vld [vmem:[#allocation2] sm:$0xff]  ;;  %v1888_v44 = vld [vmem:[#allocation2 + $0x138] sm:$0xff]  ;;  %v244_v15 = vunpack.c.l.b16 %v2340_v6 }
  0x1f   :  { %650 = vmatpush.bf16.msra.mxu0 %v1854_v16  ;;  %v1858_v33 = vld [vmem:[#allocation2 + $0x48] sm:$0xff]  ;;  %v1857_v37 = vld [vmem:[#allocation2 + $0x40] sm:$0xff]  ;;  %v1896_v45 = vld [vmem:[#allocation2 + $0x178] sm:$0xff]  ;;  %v245_v16 = vunpack.c.h.b16 %v2340_v6 }
  0x20   :  { %663 = vmatpush.bf16.msra.mxu1 %v1862_v17  ;;  %v1866_v34 = vld [vmem:[#allocation2 + $0x88] sm:$0xff]  ;;  %v1865_v40 = vld [vmem:[#allocation2 + $0x80] sm:$0xff]  ;;  %v1904_v46 = vld [vmem:[#allocation2 + $0x1b8] sm:$0xff] }
  0x21   :  { %676 = vmatpush.bf16.msra.mxu2 %v1870_v18  ;;  %v1874_v35 = vld [vmem:[#allocation2 + $0xc8] sm:$0xff]  ;;  %v1873_v41 = vld [vmem:[#allocation2 + $0xc0] sm:$0xff]  ;;  %v1912_v47 = vld [vmem:[#allocation2 + $0x1f8] sm:$0xff] }
  0x22   :  { %689 = vmatpush.bf16.msra.mxu3 %v1878_v19  ;;  %v1887_v52 = vld [vmem:[#allocation2 + $0x130] sm:$0xff]  ;;  %v1886_v56 = vld [vmem:[#allocation2 + $0x128] sm:$0xff]  ;;  %v1885_v60 = vld [vmem:[#allocation2 + $0x120] sm:$0xff]  ;;  %v246_v19 = vunpack.c.l.b16 %v2342_v7 }
  0x23   :  { %651 = vmatpush.bf16.msra.mxu0 %v1853_v20  ;;  %v1895_v53 = vld [vmem:[#allocation2 + $0x170] sm:$0xff]  ;;  %v1894_v57 = vld [vmem:[#allocation2 + $0x168] sm:$0xff]  ;;  %v1893_v61 = vld [vmem:[#allocation2 + $0x160] sm:$0xff]  ;;  %v247_v20 = vunpack.c.h.b16 %v2342_v7 }
  0x24   :  { %664 = vmatpush.bf16.msra.mxu1 %v1861_v21  ;;  %v1903_v54 = vld [vmem:[#allocation2 + $0x1b0] sm:$0xff]  ;;  %v1902_v58 = vld [vmem:[#allocation2 + $0x1a8] sm:$0xff]  ;;  %v1901_v62 = vld [vmem:[#allocation2 + $0x1a0] sm:$0xff] }
  0x25   :  { %677 = vmatpush.bf16.msra.mxu2 %v1869_v22  ;;  %v1911_v55 = vld [vmem:[#allocation2 + $0x1f0] sm:$0xff]  ;;  %v1910_v59 = vld [vmem:[#allocation2 + $0x1e8] sm:$0xff]  ;;  %v1909_v63 = vld [vmem:[#allocation2 + $0x1e0] sm:$0xff] }
  0x26   :  { %690 = vmatpush.bf16.msra.mxu3 %v1877_v23  ;;  %v1884_v0 = vld [vmem:[#allocation2 + $0x118] sm:$0xff]  ;;  %v1883_v5 = vld [vmem:[#allocation2 + $0x110] sm:$0xff]  ;;  %v1882_v11 = vld [vmem:[#allocation2 + $0x108] sm:$0xff]  ;;  %v252_v23 = vpack.c.b16 %v244_v15, %v244_v15 }
  0x27   :  { %652 = vmatpush.bf16.msra.mxu0 %v1852_v24  ;;  %v1892_v1 = vld [vmem:[#allocation2 + $0x158] sm:$0xff]  ;;  %v1891_v8 = vld [vmem:[#allocation2 + $0x150] sm:$0xff]  ;;  %v1890_v12 = vld [vmem:[#allocation2 + $0x148] sm:$0xff]  ;;  %v253_v24 = vpack.c.b16 %v245_v16, %v245_v16 }
  0x28   :  { %665 = vmatpush.bf16.msra.mxu1 %v1860_v25  ;;  %v1900_v2 = vld [vmem:[#allocation2 + $0x198] sm:$0xff]  ;;  %v1899_v9 = vld [vmem:[#allocation2 + $0x190] sm:$0xff]  ;;  %v1898_v13 = vld [vmem:[#allocation2 + $0x188] sm:$0xff]  ;;  %v254_v25 = vpack.c.b16 %v246_v19, %v246_v19 }
  0x29   :  { %678 = vmatpush.bf16.msra.mxu2 %v1868_v26  ;;  %v1908_v4 = vld [vmem:[#allocation2 + $0x1d8] sm:$0xff]  ;;  %v1907_v10 = vld [vmem:[#allocation2 + $0x1d0] sm:$0xff]  ;;  %v1906_v14 = vld [vmem:[#allocation2 + $0x1c8] sm:$0xff]  ;;  %v255_v26 = vpack.c.b16 %v247_v20, %v247_v20 }
  0x2a   :  { %691 = vmatpush.bf16.msra.mxu3 %v1876_v27  ;;  %v1881_v17 = vld [vmem:[#allocation2 + $0x100] sm:$0xff] }
  0x2b   :  { %653 = vmatpush.bf16.msra.mxu0 %v1851_v28  ;;  %v1889_v18 = vld [vmem:[#allocation2 + $0x140] sm:$0xff] }
  0x2c   :  { %666 = vmatpush.bf16.msra.mxu1 %v1859_v29  ;;  %v1897_v21 = vld [vmem:[#allocation2 + $0x180] sm:$0xff] }
  0x2d   :  { %679 = vmatpush.bf16.msra.mxu2 %v1867_v30  ;;  %v1905_v22 = vld [vmem:[#allocation2 + $0x1c0] sm:$0xff] }
  0x2e   :  { %692 = vmatpush.bf16.msra.mxu3 %v1875_v31 }
  0x2f   :  { %654 = vmatpush.bf16.msra.mxu0 %v1850_v32 }
  0x30   :  { %667 = vmatpush.bf16.msra.mxu1 %v1858_v33 }
  0x31   :  { %680 = vmatpush.bf16.msra.mxu2 %v1866_v34 }
  0x32   :  { %693 = vmatpush.bf16.msra.mxu3 %v1874_v35 }
  0x33   :  { %655 = vmatpush.bf16.msra.mxu0 %v1849_v36 }
  0x34   :  { %668 = vmatpush.bf16.msra.mxu1 %v1857_v37 }
  0x35   :  { %681 = vmatpush.bf16.msra.mxu2 %v1865_v40 }
  0x36   :  { %694 = vmatpush.bf16.msra.mxu3 %v1873_v41  ;;  %656 = vmatmul.bf16.vlgmr.msra.gmra.mxu0 %v248_v49 }
  0x37   :  { %700 = vmatpush.bf16.msrb.mxu0 %v1888_v44  ;;  %669 = vmatmul.bf16.vlgmr.msra.gmra.mxu1 %v249_v51 }
  0x38   :  { %713 = vmatpush.bf16.msrb.mxu1 %v1896_v45  ;;  %682 = vmatmul.bf16.vlgmr.msra.gmra.mxu2 %v250_v48 }
  0x39   :  { %726 = vmatpush.bf16.msrb.mxu2 %v1904_v46  ;;  %695 = vmatmul.bf16.vlgmr.msra.gmra.mxu3 %v251_v50 }
  0x3a   :  { %739 = vmatpush.bf16.msrb.mxu3 %v1912_v47 }
  0x3b   :  { %701 = vmatpush.bf16.msrb.mxu0 %v1887_v52 }
  0x3c   :  { %714 = vmatpush.bf16.msrb.mxu1 %v1895_v53 }
  0x3d   :  { %727 = vmatpush.bf16.msrb.mxu2 %v1903_v54 }
  0x3e   :  { %740 = vmatpush.bf16.msrb.mxu3 %v1911_v55 }
  0x3f   :  { %702 = vmatpush.bf16.msrb.mxu0 %v1886_v56 }
  0x40   :  { %715 = vmatpush.bf16.msrb.mxu1 %v1894_v57 }
  0x41   :  { %728 = vmatpush.bf16.msrb.mxu2 %v1902_v58 }
  0x42   :  { %741 = vmatpush.bf16.msrb.mxu3 %v1910_v59 }
  0x43   :  { %703 = vmatpush.bf16.msrb.mxu0 %v1885_v60 }
  0x44   :  { %716 = vmatpush.bf16.msrb.mxu1 %v1893_v61 }
  0x45   :  { %729 = vmatpush.bf16.msrb.mxu2 %v1901_v62 }
  0x46   :  { %742 = vmatpush.bf16.msrb.mxu3 %v1909_v63 }
  0x47   :  { %704 = vmatpush.bf16.msrb.mxu0 %v1884_v0 }
  0x48   :  { %717 = vmatpush.bf16.msrb.mxu1 %v1892_v1 }
  0x49   :  { %730 = vmatpush.bf16.msrb.mxu2 %v1900_v2 }
  0x4a   :  { %743 = vmatpush.bf16.msrb.mxu3 %v1908_v4 }
  0x4b   :  { %705 = vmatpush.bf16.msrb.mxu0 %v1883_v5 }
  0x4c   :  { %718 = vmatpush.bf16.msrb.mxu1 %v1891_v8 }
  0x4d   :  { %731 = vmatpush.bf16.msrb.mxu2 %v1899_v9 }
  0x4e   :  { %744 = vmatpush.bf16.msrb.mxu3 %v1907_v10 }
  0x4f   :  { %706 = vmatpush.bf16.msrb.mxu0 %v1882_v11 }
  0x50   :  { %719 = vmatpush.bf16.msrb.mxu1 %v1890_v12 }
  0x51   :  { %732 = vmatpush.bf16.msrb.mxu2 %v1898_v13 }
  0x52   :  { %745 = vmatpush.bf16.msrb.mxu3 %v1906_v14 }
  0x53   :  { %707 = vmatpush.bf16.msrb.mxu0 %v1881_v17 }
  0x54   :  { %720 = vmatpush.bf16.msrb.mxu1 %v1889_v18 }
  0x55   :  { %733 = vmatpush.bf16.msrb.mxu2 %v1897_v21 }
  0x56   :  { %746 = vmatpush.bf16.msrb.mxu3 %v1905_v22  ;;  %708 = vmatmul.bf16.vlgmr.msrb.gmra.mxu0 %v252_v23 }
  0x57   :  { %721 = vmatmul.bf16.vlgmr.msrb.gmra.mxu1 %v253_v24 }
  0x58   :  { %734 = vmatmul.bf16.vlgmr.msrb.gmra.mxu2 %v254_v25 }
  0x59   :  { %747 = vmatmul.bf16.vlgmr.msrb.gmra.mxu3 %v255_v26 }
  0xb3   :  { %v657_v6 = vpop.f32.mrf.mxu0 }
  0xb4   :  { %v670_v27 = vpop.f32.mrf.mxu1 }
  0xb5   :  { %v671_v33 = vadd.f32 %v670_v27, %v657_v6 }
  0xbb   :  { %v683_v28 = vpop.f32.mrf.mxu2  ;;  %v659_v29 = vpop.f32.mrf.mxu0 }
  0xbc   :  { %v696_v7 = vpop.f32.mrf.mxu3  ;;  %v672_v30 = vpop.f32.mrf.mxu1  ;;  %v684_v34 = vadd.f32 %v683_v28, %v671_v33 }
  0xbe   :  { %v697_v35 = vadd.f32 %v696_v7, %v684_v34 }
  0xc3   :  { %v685_v31 = vpop.f32.mrf.mxu2 }
  0xc4   :  { %v698_v32 = vpop.f32.mrf.mxu3 }
  0xd3   :  { %v709_v36 = vpop.f32.mrf.mxu0 }
  0xd4   :  { %v722_v37 = vpop.f32.mrf.mxu1  ;;  %v710_v38 = vadd.f32 %v709_v36, %v697_v35 }
  0xd6   :  { %v723_v39 = vadd.f32 %v722_v37, %v710_v38 }
  0xdb   :  { %v735_v40 = vpop.f32.mrf.mxu2  ;;  %v711_v43 = vpop.f32.mrf.mxu0 }
  0xdc   :  { %v748_v41 = vpop.f32.mrf.mxu3  ;;  %v736_v42 = vadd.f32 %v735_v40, %v723_v39  ;;  %v724_v44 = vpop.f32.mrf.mxu1 }
  0xde   :  { %v749_v45 = vadd.f32 %v748_v41, %v736_v42 }
  0xe0   :  { %v752_v46 = vpack.c.bf16 %v749_v45, %v749_v45 }
  0xe2   :  { %753 = vst [vmem:[#allocation3] sm:$0xf] %v752_v46 }
  0xe3   :  { %v737_v47 = vpop.f32.mrf.mxu2 }
  0xe4   :  { %v750_v48 = vpop.f32.mrf.mxu3 }
  0xe9   :  { %v754_v49 = vld [vmem:[#allocation3] sm:$0xf] }
  0xea   :  { %2221 = dma.done.wait [#allocation5 + $0x1], 1024 }
  0xeb   :  { %2222 = vsyncadd [#allocation5 + $0x1], 4294966272  ;;  %s766_s21 = sshll.u32 %s2412_s10, 4  ;;  %v1960_v26 = vld [vmem:[#allocation9] ss:$0 sm:$0xff]  ;;  %s767_s21 = int_to_ptr.hbm [resolvable:$true] %s766_s21 }
  0xec   :  { %771 = dma.hbm_to_vmem [thread:$0]  %s767_s21, 1024, %s2331_s16, [#allocation5]  ;;  %v1961_v28 = vld [vmem:[%s2404_s2] ss:$0 sm:$0xff] }
  0xed   :  { %v1920_v50 = vld [vmem:[#allocation2 + $0x238] sm:$0xff]  ;;  %v1919_v51 = vld [vmem:[#allocation2 + $0x230] sm:$0xff]  ;;  %v1918_v52 = vld [vmem:[#allocation2 + $0x228] sm:$0xff] }
  0xee   :  { %836 = vmatpush.bf16.msra.mxu0 %v1920_v50  ;;  %v1917_v53 = vld [vmem:[#allocation2 + $0x220] sm:$0xff]  ;;  %v1916_v54 = vld [vmem:[#allocation2 + $0x218] sm:$0xff]  ;;  %v1915_v55 = vld [vmem:[#allocation2 + $0x210] sm:$0xff] }
  0xef   :  { %v1914_v56 = vld [vmem:[#allocation2 + $0x208] sm:$0xff]  ;;  %v1913_v57 = vld [vmem:[#allocation2 + $0x200] sm:$0xff] }
  0xf2   :  { %837 = vmatpush.bf16.msra.mxu0 %v1919_v51 }
  0xf6   :  { %838 = vmatpush.bf16.msra.mxu0 %v1918_v52 }
  0xfa   :  { %839 = vmatpush.bf16.msra.mxu0 %v1917_v53 }
  0xfe   :  { %840 = vmatpush.bf16.msra.mxu0 %v1916_v54 }
 0x102   :  { %841 = vmatpush.bf16.msra.mxu0 %v1915_v55 }
 0x106   :  { %842 = vmatpush.bf16.msra.mxu0 %v1914_v56 }
 0x10a   :  { %843 = vmatpush.bf16.msra.mxu0 %v1913_v57 }
 0x10d   :  { %844 = vmatmul.bf16.vlgmr.msra.gmra.mxu0 %v754_v49 }
 0x18a   :  { %v845_v58 = vpop.f32.mrf.mxu0 }
 0x18b   :  { %v849_v59 = vmul.f32 %v2334_v3, %v845_v58 }
 0x18d   :  { %v850_v60 = vrot.slane %v849_v59, 4  ;;  %v857_v61 = vmul.f32 %v849_v59, %v845_v58 }
 0x18f   :  { %v851_v62 = vadd.f32 %v850_v60, %v849_v59  ;;  %v858_v63 = vrot.slane %v857_v61, 4 }
 0x191   :  { %v852_v0 = vrot.slane %v851_v62, 2  ;;  %v859_v1 = vadd.f32 %v858_v63, %v857_v61 }
 0x192   :  { %v847_v2 = vpop.f32.mrf.mxu0 }
 0x193   :  { %v853_v4 = vadd.f32 %v852_v0, %v851_v62  ;;  %v860_v5 = vrot.slane %v859_v1, 2 }
 0x195   :  { %v854_v8 = vrot.slane %v853_v4, 1  ;;  %v861_v9 = vadd.f32 %v860_v5, %v859_v1 }
 0x197   :  { %v855_v10 = vadd.f32 %v854_v8, %v853_v4  ;;  %v862_v11 = vrot.slane %v861_v9, 1 }
 0x199   :  { %v856_v12 = vmul.f32 0.5, %v855_v10  ;;  %v863_v13 = vadd.f32 %v862_v11, %v861_v9 }
 0x19b   :  { %v864_v14 = vmul.f32 0.5, %v863_v13  ;;  %v865_v15 = vmul.f32 %v856_v12, %v856_v12  ;;  %v868_v25 = vsub.f32 %v845_v58, %v856_v12 }
 0x19d   :  { %v866_v16 = vsub.f32 %v864_v14, %v865_v15 }
 0x19f   :  { %v867_v17 = vmax.f32 %v866_v16, 0.0 }
 0x1a1   :  { %v869_v18 = vadd.f32 1e-05, %v867_v17 }
 0x1a3   :  { %1962 = vrsqrt.f32 %v869_v18  ;;  %vm876_vm2 = vweird.f32 %v869_v18 }
 0x1a9   :  { %v1963_v19 = vpop.eup %1962 }
 0x1aa   :  { %v871_v20 = vmul.f32 %v1963_v19, %v869_v18  ;;  %vm877_vm1 = vweird.f32 %v1963_v19 }
 0x1ab   :  { %vm878_vm3 = vmor %vm876_vm2, %vm877_vm1 }
 0x1ac   :  { %v872_v21 = vmul.f32 %v1963_v19, %v871_v20 }
 0x1ae   :  { %v873_v22 = vmul.f32 0.5, %v872_v21 }
 0x1b0   :  { %v874_v23 = vsub.f32 1.5, %v873_v22 }
 0x1b2   :  { %v875_v24 = vmul.f32 %v1963_v19, %v874_v23 }
 0x1b4   :  { %v879_v6 = vsel %vm878_vm3, %v1963_v19, %v875_v24 }
 0x1b5   :  { %v880_v27 = vmul.f32 %v879_v6, %v868_v25 }
 0x1b7   :  { %v885_v7 = vmul.f32 %v1960_v26, %v880_v27 }
 0x1b9   :  { %v890_v29 = vadd.f32 %v1961_v28, %v885_v7 }
 0x1bb   :  { %v891_v30 = vmax.f32 %v890_v29, 0.0 }
 0x1bd   :  { %v892_v31 = vpack.c.bf16 %v891_v30, %v891_v30 }
 0x1bf   :  { %893 = vst [vmem:[#allocation4] sm:$0xf] %v892_v31 }
 0x1c6   :  { %v894_v32 = vld [vmem:[#allocation4] sm:$0xf] }
 0x1c7   :  { %2223 = dma.done.wait [#allocation5], 1024 }
 0x1c8   :  { %2224 = vsyncadd [#allocation5], 4294966272  ;;  %s904_s25 = sshll.u32 %s2413_s11, 4  ;;  %v1964_v9 = vld [vmem:[%s2405_s3] ss:$0 sm:$0xff]  ;;  %s905_s25 = int_to_ptr.hbm [resolvable:$true] %s904_s25 }
 0x1c9   :  { %909 = dma.hbm_to_vmem [thread:$0]  %s905_s25, 1024, %s2347_s19, [#allocation5 + $0x1]  ;;  %v1965_v12 = vld [vmem:[%s2406_s4] ss:$0 sm:$0xff] }
 0x1ca   :  { %v1928_v33 = vld [vmem:[#allocation2 + $0x38] sm:$0xff]  ;;  %v1927_v34 = vld [vmem:[#allocation2 + $0x30] sm:$0xff]  ;;  %v1926_v35 = vld [vmem:[#allocation2 + $0x28] sm:$0xff] }
 0x1cb   :  { %974 = vmatpush.bf16.msra.mxu1 %v1928_v33  ;;  %v1925_v36 = vld [vmem:[#allocation2 + $0x20] sm:$0xff]  ;;  %v1924_v37 = vld [vmem:[#allocation2 + $0x18] sm:$0xff]  ;;  %v1923_v38 = vld [vmem:[#allocation2 + $0x10] sm:$0xff] }
 0x1cc   :  { %v1922_v39 = vld [vmem:[#allocation2 + $0x8] sm:$0xff]  ;;  %v1921_v40 = vld [vmem:[#allocation2] sm:$0xff] }
 0x1cf   :  { %975 = vmatpush.bf16.msra.mxu1 %v1927_v34 }
 0x1d3   :  { %976 = vmatpush.bf16.msra.mxu1 %v1926_v35 }
 0x1d7   :  { %977 = vmatpush.bf16.msra.mxu1 %v1925_v36 }
 0x1db   :  { %978 = vmatpush.bf16.msra.mxu1 %v1924_v37 }
 0x1df   :  { %979 = vmatpush.bf16.msra.mxu1 %v1923_v38 }
 0x1e3   :  { %980 = vmatpush.bf16.msra.mxu1 %v1922_v39 }
 0x1e7   :  { %981 = vmatpush.bf16.msra.mxu1 %v1921_v40 }
 0x1ea   :  { %982 = vmatmul.bf16.vlgmr.msra.gmra.mxu1 %v894_v32 }
 0x267   :  { %v983_v41 = vpop.f32.mrf.mxu1 }
 0x268   :  { %v987_v42 = vmul.f32 %v2334_v3, %v983_v41 }
 0x26a   :  { %v988_v43 = vrot.slane %v987_v42, 4  ;;  %v995_v44 = vmul.f32 %v987_v42, %v983_v41 }
 0x26c   :  { %v989_v45 = vadd.f32 %v988_v43, %v987_v42  ;;  %v996_v46 = vrot.slane %v995_v44, 4 }
 0x26e   :  { %v990_v47 = vrot.slane %v989_v45, 2  ;;  %v997_v48 = vadd.f32 %v996_v46, %v995_v44 }
 0x26f   :  { %v985_v49 = vpop.f32.mrf.mxu1 }
 0x270   :  { %v991_v50 = vadd.f32 %v990_v47, %v989_v45  ;;  %v998_v51 = vrot.slane %v997_v48, 2 }
 0x272   :  { %v992_v52 = vrot.slane %v991_v50, 1  ;;  %v999_v53 = vadd.f32 %v998_v51, %v997_v48 }
 0x274   :  { %v993_v54 = vadd.f32 %v992_v52, %v991_v50  ;;  %v1000_v55 = vrot.slane %v999_v53, 1 }
 0x276   :  { %v994_v56 = vmul.f32 0.5, %v993_v54  ;;  %v1001_v57 = vadd.f32 %v1000_v55, %v999_v53 }
 0x278   :  { %v1002_v58 = vmul.f32 0.5, %v1001_v57  ;;  %v1003_v59 = vmul.f32 %v994_v56, %v994_v56  ;;  %v1006_v8 = vsub.f32 %v983_v41, %v994_v56 }
 0x27a   :  { %v1004_v60 = vsub.f32 %v1002_v58, %v1003_v59 }
 0x27c   :  { %v1005_v61 = vmax.f32 %v1004_v60, 0.0 }
 0x27e   :  { %v1007_v62 = vadd.f32 1e-05, %v1005_v61 }
 0x280   :  { %1966 = vrsqrt.f32 %v1007_v62  ;;  %vm1014_vm5 = vweird.f32 %v1007_v62 }
 0x286   :  { %v1967_v63 = vpop.eup %1966 }
 0x287   :  { %v1009_v0 = vmul.f32 %v1967_v63, %v1007_v62  ;;  %vm1015_vm4 = vweird.f32 %v1967_v63 }
 0x288   :  { %vm1016_vm6 = vmor %vm1014_vm5, %vm1015_vm4 }
 0x289   :  { %v1010_v1 = vmul.f32 %v1967_v63, %v1009_v0 }
 0x28b   :  { %v1011_v2 = vmul.f32 0.5, %v1010_v1 }
 0x28d   :  { %v1012_v4 = vsub.f32 1.5, %v1011_v2 }
 0x28f   :  { %v1013_v5 = vmul.f32 %v1967_v63, %v1012_v4 }
 0x291   :  { %v1017_v10 = vsel %vm1016_vm6, %v1967_v63, %v1013_v5 }
 0x292   :  { %v1018_v11 = vmul.f32 %v1017_v10, %v1006_v8 }
 0x294   :  { %v1023_v13 = vmul.f32 %v1964_v9, %v1018_v11 }
 0x296   :  { %v1028_v14 = vadd.f32 %v1965_v12, %v1023_v13 }
 0x298   :  { %v1029_v15 = vmax.f32 %v1028_v14, 0.0 }
 0x29a   :  { %v1030_v16 = vpack.c.bf16 %v1029_v15, %v1029_v15 }
 0x29c   :  { %1031 = vst [vmem:[#allocation3] sm:$0xf] %v1030_v16 }
 0x2a3   :  { %v1032_v17 = vld [vmem:[#allocation3] sm:$0xf] }
 0x2a4   :  { %2225 = dma.done.wait [#allocation5 + $0x1], 1024 }
 0x2a5   :  { %2226 = vsyncadd [#allocation5 + $0x1], 4294966272  ;;  %s1042_s29 = sshll.u32 %s2414_s12, 4  ;;  %s1043_s29 = int_to_ptr.hbm [resolvable:$true] %s1042_s29 }
 0x2a6   :  { %1047 = dma.hbm_to_vmem [thread:$0]  %s1043_s29, 1024, %s2331_s16, [#allocation5] }
 0x2a7   :  { %v1936_v18 = vld [vmem:[#allocation2 + $0x238] sm:$0xff]  ;;  %v1935_v19 = vld [vmem:[#allocation2 + $0x230] sm:$0xff]  ;;  %v1934_v20 = vld [vmem:[#allocation2 + $0x228] sm:$0xff] }
 0x2a8   :  { %1112 = vmatpush.bf16.msra.mxu2 %v1936_v18  ;;  %v1933_v21 = vld [vmem:[#allocation2 + $0x220] sm:$0xff]  ;;  %v1932_v22 = vld [vmem:[#allocation2 + $0x218] sm:$0xff]  ;;  %v1931_v23 = vld [vmem:[#allocation2 + $0x210] sm:$0xff] }
 0x2a9   :  { %v1930_v24 = vld [vmem:[#allocation2 + $0x208] sm:$0xff]  ;;  %v1929_v25 = vld [vmem:[#allocation2 + $0x200] sm:$0xff] }
 0x2ac   :  { %1113 = vmatpush.bf16.msra.mxu2 %v1935_v19 }
 0x2b0   :  { %1114 = vmatpush.bf16.msra.mxu2 %v1934_v20 }
 0x2b4   :  { %1115 = vmatpush.bf16.msra.mxu2 %v1933_v21 }
 0x2b8   :  { %1116 = vmatpush.bf16.msra.mxu2 %v1932_v22 }
 0x2bc   :  { %1117 = vmatpush.bf16.msra.mxu2 %v1931_v23 }
 0x2c0   :  { %1118 = vmatpush.bf16.msra.mxu2 %v1930_v24 }
 0x2c4   :  { %1119 = vmatpush.bf16.msra.mxu2 %v1929_v25 }
 0x2c7   :  { %1120 = vmatmul.bf16.vlgmr.msra.gmra.mxu2 %v1032_v17 }
 0x34a   :  { %v1121_v26 = vpop.f32.mrf.mxu2 }
 0x34b   :  { %v1125_v6 = vmul.f32 %v2334_v3, %v1121_v26 }
 0x34d   :  { %v1126_v27 = vrot.slane %v1125_v6, 4  ;;  %v1133_v28 = vmul.f32 %v1125_v6, %v1121_v26 }
 0x34f   :  { %v1127_v7 = vadd.f32 %v1126_v27, %v1125_v6  ;;  %v1134_v29 = vrot.slane %v1133_v28, 4 }
 0x351   :  { %v1128_v30 = vrot.slane %v1127_v7, 2  ;;  %v1135_v31 = vadd.f32 %v1134_v29, %v1133_v28 }
 0x352   :  { %v1123_v32 = vpop.f32.mrf.mxu2 }
 0x353   :  { %v1129_v33 = vadd.f32 %v1128_v30, %v1127_v7  ;;  %v1136_v34 = vrot.slane %v1135_v31, 2 }
 0x355   :  { %v1130_v35 = vrot.slane %v1129_v33, 1  ;;  %v1137_v36 = vadd.f32 %v1136_v34, %v1135_v31 }
 0x357   :  { %v1131_v37 = vadd.f32 %v1130_v35, %v1129_v33  ;;  %v1138_v38 = vrot.slane %v1137_v36, 1 }
 0x359   :  { %v1132_v39 = vmul.f32 0.5, %v1131_v37  ;;  %v1139_v40 = vadd.f32 %v1138_v38, %v1137_v36 }
 0x35b   :  { %v1140_v41 = vmul.f32 0.5, %v1139_v40  ;;  %v1141_v42 = vmul.f32 %v1132_v39, %v1132_v39  ;;  %v1144_v52 = vsub.f32 %v1121_v26, %v1132_v39 }
 0x35d   :  { %v1142_v43 = vsub.f32 %v1140_v41, %v1141_v42 }
 0x35f   :  { %v1143_v44 = vmax.f32 %v1142_v43, 0.0 }
 0x361   :  { %v1145_v45 = vadd.f32 1e-05, %v1143_v44 }
 0x363   :  { %1968 = vrsqrt.f32 %v1145_v45  ;;  %vm1152_vm8 = vweird.f32 %v1145_v45 }
 0x369   :  { %v1969_v46 = vpop.eup %1968 }
 0x36a   :  { %v1147_v47 = vmul.f32 %v1969_v46, %v1145_v45  ;;  %vm1153_vm7 = vweird.f32 %v1969_v46 }
 0x36b   :  { %vm1154_vm9 = vmor %vm1152_vm8, %vm1153_vm7 }
 0x36c   :  { %v1148_v48 = vmul.f32 %v1969_v46, %v1147_v47 }
 0x36e   :  { %v1149_v49 = vmul.f32 0.5, %v1148_v48 }
 0x370   :  { %v1150_v50 = vsub.f32 1.5, %v1149_v49 }
 0x372   :  { %v1151_v51 = vmul.f32 %v1969_v46, %v1150_v50 }
 0x374   :  { %v1155_v53 = vsel %vm1154_vm9, %v1969_v46, %v1151_v51 }
 0x375   :  { %v1156_v54 = vmul.f32 %v1155_v53, %v1144_v52 }
 0x377   :  { %1157 = vst [vmem:[#allocation11] sm:$0xff] %v1156_v54  ;;  %v1158_v55 = vpack.c.bf16 %v1156_v54, %v1156_v54 }
 0x379   :  { %1159 = vst [vmem:[#allocation4] sm:$0xf] %v1158_v55 }
 0x380   :  { %v1160_v56 = vld [vmem:[#allocation4] sm:$0xf] }
 0x381   :  { %2227 = dma.done.wait [#allocation5], 1024 }
 0x382   :  { %2228 = vsyncadd [#allocation5], 4294966272  ;;  %s1170_s12 = sshll.u32 %s2415_s13, 4  ;;  %v1970_v30 = vld [vmem:[%s2407_s5] ss:$0 sm:$0xff]  ;;  %s1171_s12 = int_to_ptr.hbm [resolvable:$true] %s1170_s12 }
 0x383   :  { %1175 = dma.hbm_to_vmem [thread:$0]  %s1171_s12, 1024, %s2347_s19, [#allocation5 + $0x1]  ;;  %v1971_v33 = vld [vmem:[%s2408_s6] ss:$0 sm:$0xff] }
 0x384   :  { %v1944_v57 = vld [vmem:[#allocation2 + $0x38] sm:$0xff]  ;;  %v1943_v58 = vld [vmem:[#allocation2 + $0x30] sm:$0xff]  ;;  %v1942_v59 = vld [vmem:[#allocation2 + $0x28] sm:$0xff] }
 0x385   :  { %1240 = vmatpush.bf16.msra.mxu3 %v1944_v57  ;;  %v1941_v60 = vld [vmem:[#allocation2 + $0x20] sm:$0xff]  ;;  %v1940_v61 = vld [vmem:[#allocation2 + $0x18] sm:$0xff]  ;;  %v1939_v62 = vld [vmem:[#allocation2 + $0x10] sm:$0xff] }
 0x386   :  { %v1938_v63 = vld [vmem:[#allocation2 + $0x8] sm:$0xff]  ;;  %v1937_v0 = vld [vmem:[#allocation2] sm:$0xff] }
 0x389   :  { %1241 = vmatpush.bf16.msra.mxu3 %v1943_v58 }
 0x38d   :  { %1242 = vmatpush.bf16.msra.mxu3 %v1942_v59 }
 0x391   :  { %1243 = vmatpush.bf16.msra.mxu3 %v1941_v60 }
 0x395   :  { %1244 = vmatpush.bf16.msra.mxu3 %v1940_v61 }
 0x399   :  { %1245 = vmatpush.bf16.msra.mxu3 %v1939_v62 }
 0x39d   :  { %1246 = vmatpush.bf16.msra.mxu3 %v1938_v63 }
 0x3a1   :  { %1247 = vmatpush.bf16.msra.mxu3 %v1937_v0 }
 0x3a4   :  { %1248 = vmatmul.bf16.vlgmr.msra.gmra.mxu3 %v1160_v56 }
 0x427   :  { %v1249_v1 = vpop.f32.mrf.mxu3 }
 0x428   :  { %v1253_v2 = vmul.f32 %v2334_v3, %v1249_v1 }
 0x42a   :  { %v1254_v4 = vrot.slane %v1253_v2, 4  ;;  %v1261_v5 = vmul.f32 %v1253_v2, %v1249_v1 }
 0x42c   :  { %v1255_v8 = vadd.f32 %v1254_v4, %v1253_v2  ;;  %v1262_v9 = vrot.slane %v1261_v5, 4 }
 0x42e   :  { %v1256_v10 = vrot.slane %v1255_v8, 2  ;;  %v1263_v11 = vadd.f32 %v1262_v9, %v1261_v5 }
 0x42f   :  { %v1251_v12 = vpop.f32.mrf.mxu3 }
 0x430   :  { %v1257_v13 = vadd.f32 %v1256_v10, %v1255_v8  ;;  %v1264_v14 = vrot.slane %v1263_v11, 2 }
 0x432   :  { %v1258_v15 = vrot.slane %v1257_v13, 1  ;;  %v1265_v16 = vadd.f32 %v1264_v14, %v1263_v11 }
 0x434   :  { %v1259_v17 = vadd.f32 %v1258_v15, %v1257_v13  ;;  %v1266_v18 = vrot.slane %v1265_v16, 1 }
 0x436   :  { %v1260_v19 = vmul.f32 0.5, %v1259_v17  ;;  %v1267_v20 = vadd.f32 %v1266_v18, %v1265_v16 }
 0x438   :  { %v1268_v21 = vmul.f32 0.5, %v1267_v20  ;;  %v1269_v22 = vmul.f32 %v1260_v19, %v1260_v19  ;;  %v1272_v29 = vsub.f32 %v1249_v1, %v1260_v19 }
 0x43a   :  { %v1270_v23 = vsub.f32 %v1268_v21, %v1269_v22 }
 0x43c   :  { %v1271_v24 = vmax.f32 %v1270_v23, 0.0 }
 0x43e   :  { %v1273_v3 = vadd.f32 1e-05, %v1271_v24 }
 0x440   :  { %1972 = vrsqrt.f32 %v1273_v3  ;;  %vm1280_vm11 = vweird.f32 %v1273_v3 }
 0x446   :  { %v1973_v25 = vpop.eup %1972 }
 0x447   :  { %v1275_v26 = vmul.f32 %v1973_v25, %v1273_v3  ;;  %vm1281_vm10 = vweird.f32 %v1973_v25 }
 0x448   :  { %vm1282_vm12 = vmor %vm1280_vm11, %vm1281_vm10 }
 0x449   :  { %v1276_v6 = vmul.f32 %v1973_v25, %v1275_v26 }
 0x44b   :  { %v1277_v27 = vmul.f32 0.5, %v1276_v6 }
 0x44d   :  { %v1278_v28 = vsub.f32 1.5, %v1277_v27 }
 0x44f   :  { %v1279_v7 = vmul.f32 %v1973_v25, %v1278_v28 }
 0x451   :  { %v1283_v31 = vsel %vm1282_vm12, %v1973_v25, %v1279_v7 }
 0x452   :  { %v1284_v32 = vmul.f32 %v1283_v31, %v1272_v29 }
 0x454   :  { %v1289_v34 = vmul.f32 %v1970_v30, %v1284_v32 }
 0x456   :  { %v1294_v35 = vadd.f32 %v1971_v33, %v1289_v34 }
 0x458   :  { %v1295_v36 = vmax.f32 %v1294_v35, 0.0 }
 0x45a   :  { %v1296_v37 = vpack.c.bf16 %v1295_v36, %v1295_v36 }
 0x45c   :  { %1297 = vst [vmem:[#allocation3] sm:$0xf] %v1296_v37 }
 0x463   :  { %v1298_v38 = vld [vmem:[#allocation3] sm:$0xf] }
 0x464   :  { %2229 = dma.done.wait [#allocation5 + $0x1], 1024 }
 0x465   :  { %2230 = vsyncadd [#allocation5 + $0x1], 4294966272  ;;  %v1952_v39 = vld [vmem:[#allocation2 + $0x238] sm:$0xff]  ;;  %v1951_v40 = vld [vmem:[#allocation2 + $0x230] sm:$0xff]  ;;  %s2240_s5 = smov [#allocation11]   ;;  %s1390_s18 = sshll.u32 %s2416_s14, 4  ;;  %s1391_s18 = int_to_ptr.hbm [resolvable:$true] %s1390_s18 }
 0x466   :  { %1369 = vmatpush.bf16.msrb.mxu0 %v1952_v39  ;;  %v1950_v41 = vld [vmem:[#allocation2 + $0x228] sm:$0xff]  ;;  %v1949_v42 = vld [vmem:[#allocation2 + $0x220] sm:$0xff]  ;;  %v1948_v43 = vld [vmem:[#allocation2 + $0x218] sm:$0xff]  ;;  %s1388_s6 = sshll.u32 %s2240_s5, 4  ;;  %s2241_s20 = smov [#allocation12]   ;;  %s1389_s6 = int_to_ptr.vmem [resolvable:$true] %s1388_s6 }
 0x467   :  { %v1947_v44 = vld [vmem:[#allocation2 + $0x210] sm:$0xff]  ;;  %v1946_v45 = vld [vmem:[#allocation2 + $0x208] sm:$0xff]  ;;  %v1945_v46 = vld [vmem:[#allocation2 + $0x200] sm:$0xff]  ;;  %1393 = dma.vmem_to_hbm [thread:$0]  %s1389_s6, 128, %s1391_s18, [#allocation8]  }
 0x468   :  { %v1974_v47 = vld [vmem:[%s2409_s7] ss:$0 sm:$0xff]  ;;  %s1399_s21 = sshll.u32 %s2241_s20, 4  ;;  %s1401_s23 = sshll.u32 %s2417_s15, 4  ;;  %s1400_s21 = int_to_ptr.vmem [resolvable:$true] %s1399_s21  ;;  %s1402_s23 = int_to_ptr.hbm [resolvable:$true] %s1401_s23 }
 0x46a   :  { %1370 = vmatpush.bf16.msrb.mxu0 %v1951_v40 }
 0x46e   :  { %1371 = vmatpush.bf16.msrb.mxu0 %v1950_v41 }
 0x472   :  { %1372 = vmatpush.bf16.msrb.mxu0 %v1949_v42 }
 0x476   :  { %1373 = vmatpush.bf16.msrb.mxu0 %v1948_v43 }
 0x47a   :  { %1374 = vmatpush.bf16.msrb.mxu0 %v1947_v44 }
 0x47e   :  { %1375 = vmatpush.bf16.msrb.mxu0 %v1946_v45 }
 0x482   :  { %1376 = vmatpush.bf16.msrb.mxu0 %v1945_v46 }
 0x485   :  { %1377 = vmatmul.bf16.vlgmr.msrb.gmra.mxu0 %v1298_v38 }
 0x502   :  { %v1378_v48 = vpop.f32.mrf.mxu0 }
 0x503   :  { %v1379_v49 = vadd.f32 %v1974_v47, %v1378_v48 }
 0x505   :  { %1382 = vst [vmem:[#allocation12] sm:$0xff] %v1379_v49 }
 0x506   :  { %1404 = dma.vmem_to_hbm [thread:$0]  %s1400_s21, 128, %s1402_s23, [#allocation13]  }
 0x50a   :  { %v1380_v50 = vpop.f32.mrf.mxu0 }
 0x50b   :  { %2231 = dma.done.wait [#allocation8], 128  }
 0x50c   :  { %2232 = vsyncadd [#allocation8], 4294967168 }
 0x50d   :  { %2233 = dma.done.wait [#allocation13], 128  }
 0x50e   :  { %2234 = vsyncadd [#allocation13], 4294967168 }
 0x50f   :  { %1413 = vsyncpa [#allocation7], 1 }
 0x510   :  { %1414 = vsyncpa [#allocation10], 1 }
 0x511   :  { %1415 = vsyncpa [#allocation8], 1 }
 0x512   :  { %1416 = vsyncpa [#allocation13], 1 }
 0x513   :  { %1417 = vsyncmov [#allocation5] }
 0x516   :  { %s1418_s7 = vpop.sfrf %1417 }
 0x517   :  { %p1847_p0 = scmp.ne.s32.totalorder %s1418_s7, 0 }
 0x519   :  { %1422 = shalt.err (%p1847_p0)  }
 0x51a   :  { %1424 = vsyncmov [#allocation5 + $0x1] }
 0x51d   :  { %s1425_s14 = vpop.sfrf %1424 }
 0x51e   :  { %p1848_p1 = scmp.ne.s32.totalorder %s1425_s14, 0 }
 0x520   :  { %1429 = shalt.err (%p1848_p1)  }

</bundles_post_ra>
